<compile_context>
chip_gen: v7x
topology: tpu7x:2x2x1
jax: 0.10.0
libtpu: 0.0.40
codegen_flags: <defaults>
</compile_context>

<pallas_src>
import functools

import jax
import jax.numpy as jnp
from jax import lax
from jax.experimental import pallas as pl
from jax.experimental.pallas import tpu as pltpu


def _mkrb_kernel(x_ref, w1_ref, b1_ref, w2_ref, b2_ref, mask_ref, o_ref,
                 fpad_ref, col1_ref, col2_ref, *, C, Wp, L, K1P, K2P):
    """Fused MKRB forward for one batch element (channels-on-sublanes layout).

    x_ref   : (1, C, Hp*Wp)  f32   zero-padded input, spatially flattened
    w1_ref  : (C, K1P)       bf16  BN-folded 3x3 im2col weights (zero padded)
    b1_ref  : (C, 1)         f32   BN-folded bias (conv1)
    w2_ref  : (C, K2P)       bf16  BN-folded 5x5 im2col weights (zero padded)
    b2_ref  : (C, 1)         f32   BN-folded bias (conv2)
    mask_ref: (1, L)         f32   1.0 where a wide column is a real pixel
    o_ref   : (1, C, L)      f32   output in wide layout (wrapper drops halo)
    fpad_ref: (C, Hp*Wp+Wp)  f32   zero-haloed buffer for `fused` (conv2 input)
    col1_ref: (K1P, L)       f32   im2col scratch, 3x3 conv
    col2_ref: (K2P, L)       f32   im2col scratch, 5x5 conv
    """
    x0 = x_ref[0]                                    # (C, Hp*Wp) f32, ~4 vregs
    mask = mask_ref[...]                             # (1, L) f32

    # ---- conv1: 3x3 / pad 1 -> BN -> ReLU -> residual(x) -> ReLU -----------
    # im2col: 9 contiguous lane-slice copies at static offsets.
    for kh in range(3):
        for kw in range(3):
            t = kh * 3 + kw
            # +1: the 3x3 conv only uses pad=1 of the shared pad=2 halo.
            off = (kh + 1) * Wp + (kw + 1)
            col1_ref[t * C:(t + 1) * C, :] = x0[:, off:off + L]
    if K1P > 9 * C:
        # Contraction zero-padding rows (rewritten every step: no stale/NaN
        # VMEM and no dependence on program_id==0 running on this core).
        col1_ref[9 * C:, :] = jnp.zeros((K1P - 9 * C, L), jnp.float32)

    y0 = jnp.dot(w1_ref[...], col1_ref[...].astype(jnp.bfloat16),
                 preferred_element_type=jnp.float32)           # (C, L) f32
    y0 = jnp.maximum(y0 + b1_ref[...], 0.0)
    x_res = x0[:, 2 * Wp + 2:2 * Wp + 2 + L]                   # residual, f32
    fused = jnp.maximum(y0 + x_res, 0.0)                       # (C, L) f32

    # ---- place `fused` into conv2's zero-haloed padded buffer --------------
    # Unconditional zeroing (a few vregs) -> no cross-program / cross-core
    # scratch state; the masked interior write keeps all halo positions zero.
    fpad_ref[...] = jnp.zeros_like(fpad_ref)
    fpad_ref[:, 2 * Wp + 2:2 * Wp + 2 + L] = fused * mask

    # ---- conv2: 5x5 / pad 2 -> BN -> ReLU -> residual(fused) -> ReLU -------
    # (Dropout2d is the identity in eval mode.)
    for kh in range(5):
        for kw in range(5):
            t = kh * 5 + kw
            off = kh * Wp + kw
            col2_ref[t * C:(t + 1) * C, :] = fpad_ref[:, off:off + L]
    if K2P > 25 * C:
        col2_ref[25 * C:, :] = jnp.zeros((K2P - 25 * C, L), jnp.float32)

    y1 = jnp.dot(w2_ref[...], col2_ref[...].astype(jnp.bfloat16),
                 preferred_element_type=jnp.float32)           # (C, L) f32
    y1 = jnp.maximum(y1 + b2_ref[...], 0.0)
    o_ref[0] = jnp.maximum(y1 + fused, 0.0)


def _fold_bn(w_hwio, conv_bias, gamma, beta, mean, var, eps=1e-5):
    """Fold eval-mode BatchNorm into conv weight/bias (per output channel)."""
    scale = gamma / jnp.sqrt(var + eps)                # (Cout,)
    w_folded = w_hwio * scale[None, None, None, :]     # (K,K,Cin,Cout)
    b_folded = (conv_bias - mean) * scale + beta       # (Cout,)
    return w_folded, b_folded


def _im2col_weight(w_folded, k_pad):
    """(K,K,Cin,Cout) HWIO -> (Cout, K*K*Cin) zero-padded to k_pad, bf16."""
    K, _, Cin, Cout = w_folded.shape
    wmat = w_folded.reshape(K * K * Cin, Cout).T       # (Cout, K*K*Cin)
    wmat = jnp.pad(wmat, ((0, 0), (0, k_pad - K * K * Cin)))
    return wmat.astype(jnp.bfloat16)


def mkrb_forward(x_nchw, params):
    """MKRB forward (eval mode). x_nchw: (N, C, H, W) f32 -> (N, C, H, W) f32."""
    N, C, H, W = x_nchw.shape
    P = 2                                   # shared halo (max of conv pads 1, 2)
    Hp, Wp = H + 2 * P, W + 2 * P
    pad_len = Hp * Wp                       # flattened padded spatial length
    L = H * Wp                              # "wide" output length per image
    K1P = pl.cdiv(9 * C, 128) * 128         # im2col contraction, MXU-padded
    K2P = pl.cdiv(25 * C, 128) * 128

    x = x_nchw.astype(jnp.float32)
    x_pad = jnp.pad(x, ((0, 0), (0, 0), (P, P), (P, P))).reshape(N, C, pad_len)

    # Fold BN in f32, lay weights out as im2col matrices, cast to bf16 once.
    w1f, b1 = _fold_bn(params["w1"], params["cb1"], params["g1"],
                       params["be1"], params["m1"], params["v1"])
    w2f, b2 = _fold_bn(params["w2"], params["cb2"], params["g2"],
                       params["be2"], params["m2"], params["v2"])
    w1m = _im2col_weight(w1f, K1P)
    w2m = _im2col_weight(w2f, K2P)

    # 1.0 where a wide column j = h*Wp + w is a real pixel (w < W).
    mask = (jnp.arange(L) % Wp < W).astype(jnp.float32).reshape(1, L)

    kernel = functools.partial(_mkrb_kernel, C=C, Wp=Wp, L=L, K1P=K1P, K2P=K2P)
    out_wide = pl.pallas_call(
        kernel,
        out_shape=jax.ShapeDtypeStruct((N, C, L), jnp.float32),
        grid=(N,),
        in_specs=[
            pl.BlockSpec((1, C, pad_len), lambda n: (n, 0, 0)),   # padded x
            pl.BlockSpec((C, K1P), lambda n: (0, 0)),             # w1 (bf16, VMEM-resident)
            pl.BlockSpec((C, 1), lambda n: (0, 0)),               # b1
            pl.BlockSpec((C, K2P), lambda n: (0, 0)),             # w2 (bf16, VMEM-resident)
            pl.BlockSpec((C, 1), lambda n: (0, 0)),               # b2
            pl.BlockSpec((1, L), lambda n: (0, 0)),                # wide-column mask
        ],
        out_specs=pl.BlockSpec((1, C, L), lambda n: (n, 0, 0)),
        scratch_shapes=[
            pltpu.VMEM((C, pad_len + Wp), jnp.float32),   # zero-haloed `fused`
            pltpu.VMEM((K1P, L), jnp.float32),            # im2col, 3x3
            pltpu.VMEM((K2P, L), jnp.float32),            # im2col, 5x5
        ],
        compiler_params=pltpu.CompilerParams(
            dimension_semantics=("parallel",),
            vmem_limit_bytes=32 * 1024 * 1024),
    )(x_pad, w1m, b1.reshape(C, 1), w2m, b2.reshape(C, 1), mask)

    # Drop the halo ("garbage") columns of the wide layout.
    return out_wide.reshape(N, C, H, Wp)[:, :, :, :W]


def mkrb_reference(x_nchw, params):
    """Pure-JAX f32 reference (NHWC convs) for correctness checking."""
    def block(inp, w_hwio, cb, g, be, m, v):
        y = lax.conv_general_dilated(
            inp, w_hwio, window_strides=(1, 1), padding="SAME",
            dimension_numbers=("NHWC", "HWIO", "NHWC"))
        y = y + cb[None, None, None, :]
        y = g * (y - m) / jnp.sqrt(v + 1e-5) + be
        y = jnp.maximum(y, 0.0)
        y = y + inp
        return jnp.maximum(y, 0.0)

    x = jnp.transpose(x_nchw, (0, 2, 3, 1)).astype(jnp.float32)
    fused = block(x, params["w1"], params["cb1"], params["g1"],
                  params["be1"], params["m1"], params["v1"])
    out = block(fused, params["w2"], params["cb2"], params["g2"],
                params["be2"], params["m2"], params["v2"])
    return jnp.transpose(out, (0, 3, 1, 2))


def make_params(key, cin, cout):
    ks = jax.random.split(key, 12)
    p = {}
    # conv1: 3x3, conv2: 5x5, weights stored HWIO
    p["w1"] = 0.1 * jax.random.normal(ks[0], (3, 3, cin, cout), jnp.float32)
    p["cb1"] = 0.05 * jax.random.normal(ks[1], (cout,), jnp.float32)
    p["g1"] = 1.0 + 0.1 * jax.random.normal(ks[2], (cout,), jnp.float32)
    p["be1"] = 0.1 * jax.random.normal(ks[3], (cout,), jnp.float32)
    p["m1"] = 0.1 * jax.random.normal(ks[4], (cout,), jnp.float32)
    p["v1"] = 0.5 + jnp.abs(jax.random.normal(ks[5], (cout,), jnp.float32))

    p["w2"] = 0.1 * jax.random.normal(ks[6], (5, 5, cout, cout), jnp.float32)
    p["cb2"] = 0.05 * jax.random.normal(ks[7], (cout,), jnp.float32)
    p["g2"] = 1.0 + 0.1 * jax.random.normal(ks[8], (cout,), jnp.float32)
    p["be2"] = 0.1 * jax.random.normal(ks[9], (cout,), jnp.float32)
    p["m2"] = 0.1 * jax.random.normal(ks[10], (cout,), jnp.float32)
    p["v2"] = 0.5 + jnp.abs(jax.random.normal(ks[11], (cout,), jnp.float32))
    return p


if __name__ == "__main__":
    # Residual adds (y0 + x, y1 + fused) require in_channels == out_channels.
    N, C, H, W = 2, 8, 16, 16
    key = jax.random.PRNGKey(0)
    kx, kp = jax.random.split(key)
    x = jax.random.normal(kx, (N, C, H, W), jnp.float32)
    params = make_params(kp, C, C)

    # TODO(synk): training-mode BatchNorm (batch statistics) and Dropout2d
    # random masking are not implemented; this reproduces eval/inference
    # semantics (BN folded from running stats, dropout = identity).
    out = jax.block_until_ready(jax.jit(mkrb_forward)(x, params))
    ref = jax.block_until_ready(mkrb_reference(x, params))

    assert out.shape == (N, C, H, W)
    # bf16 MXU operands with f32 accumulation vs a pure-f32 reference:
    # allow bf16-level relative error; structural bugs would be >> this.
    err = jnp.max(jnp.abs(out - ref) / (1.0 + jnp.abs(ref)))
    assert err < 5e-2, f"mismatch vs reference: {err}"
    print("KERNEL_OK")
</pallas_src>

<mosaic_0001>
module attributes {stable_mosaic.version = 11 : i64} {
  func.func @_mkrb_kernel(%arg0: i32, %arg1: memref<1x8x400xf32, #tpu.memory_space<vmem>>, %arg2: memref<8x128xbf16, #tpu.memory_space<vmem>>, %arg3: memref<8x1xf32, #tpu.memory_space<vmem>>, %arg4: memref<8x256xbf16, #tpu.memory_space<vmem>>, %arg5: memref<8x1xf32, #tpu.memory_space<vmem>>, %arg6: memref<1x320xf32, #tpu.memory_space<vmem>>, %arg7: memref<1x8x320xf32, #tpu.memory_space<vmem>>, %arg8: memref<8x420xf32, #tpu.memory_space<vmem>>, %arg9: memref<128x320xf32, #tpu.memory_space<vmem>>, %arg10: memref<256x320xf32, #tpu.memory_space<vmem>>) attributes {dimension_semantics = [#tpu.dimension_semantics<parallel>], iteration_bounds = array<i64: 2>, scalar_prefetch = 0 : i64, scratch_operands = 3 : i64, tpu.core_type = #tpu.core_type<tc>, window_params = [{transform_indices = @transform_0, window_bounds = array<i64: 1, 8, 400>}, {pipeline_mode = #tpu.pipeline_mode<synchronous>, transform_indices = @transform_1, window_bounds = array<i64: 8, 128>}, {pipeline_mode = #tpu.pipeline_mode<synchronous>, transform_indices = @transform_2, window_bounds = array<i64: 8, 1>}, {pipeline_mode = #tpu.pipeline_mode<synchronous>, transform_indices = @transform_3, window_bounds = array<i64: 8, 256>}, {pipeline_mode = #tpu.pipeline_mode<synchronous>, transform_indices = @transform_4, window_bounds = array<i64: 8, 1>}, {pipeline_mode = #tpu.pipeline_mode<synchronous>, transform_indices = @transform_5, window_bounds = array<i64: 1, 320>}, {transform_indices = @transform_6, window_bounds = array<i64: 1, 8, 320>}]} {
    %c0 = arith.constant 0 : index
    %c0_0 = arith.constant 0 : index
    %c0_1 = arith.constant 0 : index
    %0 = vector.load %arg1[%c0, %c0_0, %c0_1] : memref<1x8x400xf32, #tpu.memory_space<vmem>>, vector<1x8x400xf32>
    %1 = vector.shape_cast %0 : vector<1x8x400xf32> to vector<8x400xf32>
    %c0_2 = arith.constant 0 : index
    %c0_3 = arith.constant 0 : index
    %2 = vector.load %arg6[%c0_2, %c0_3] : memref<1x320xf32, #tpu.memory_space<vmem>>, vector<1x320xf32>
    %3 = vector.extract_strided_slice %1 {offsets = [0, 21], sizes = [8, 320], strides = [1, 1]} : vector<8x400xf32> to vector<8x320xf32>
    %c0_4 = arith.constant 0 : index
    %c0_5 = arith.constant 0 : index
    %4 = vector.load %arg9[%c0_4, %c0_5] : memref<128x320xf32, #tpu.memory_space<vmem>>, vector<8x320xf32>
    tpu.vector_store %arg9[%c0_4, %c0_5], %3 {strides = array<i32>} : memref<128x320xf32, #tpu.memory_space<vmem>>, vector<8x320xf32>,
    %5 = vector.extract_strided_slice %1 {offsets = [0, 22], sizes = [8, 320], strides = [1, 1]} : vector<8x400xf32> to vector<8x320xf32>
    %c8 = arith.constant 8 : index
    %c0_6 = arith.constant 0 : index
    %6 = vector.load %arg9[%c8, %c0_6] : memref<128x320xf32, #tpu.memory_space<vmem>>, vector<8x320xf32>
    tpu.vector_store %arg9[%c8, %c0_6], %5 {strides = array<i32>} : memref<128x320xf32, #tpu.memory_space<vmem>>, vector<8x320xf32>,
    %7 = vector.extract_strided_slice %1 {offsets = [0, 23], sizes = [8, 320], strides = [1, 1]} : vector<8x400xf32> to vector<8x320xf32>
    %c16 = arith.constant 16 : index
    %c0_7 = arith.constant 0 : index
    %8 = vector.load %arg9[%c16, %c0_7] : memref<128x320xf32, #tpu.memory_space<vmem>>, vector<8x320xf32>
    tpu.vector_store %arg9[%c16, %c0_7], %7 {strides = array<i32>} : memref<128x320xf32, #tpu.memory_space<vmem>>, vector<8x320xf32>,
    %9 = vector.extract_strided_slice %1 {offsets = [0, 41], sizes = [8, 320], strides = [1, 1]} : vector<8x400xf32> to vector<8x320xf32>
    %c24 = arith.constant 24 : index
    %c0_8 = arith.constant 0 : index
    %10 = vector.load %arg9[%c24, %c0_8] : memref<128x320xf32, #tpu.memory_space<vmem>>, vector<8x320xf32>
    tpu.vector_store %arg9[%c24, %c0_8], %9 {strides = array<i32>} : memref<128x320xf32, #tpu.memory_space<vmem>>, vector<8x320xf32>,
    %11 = vector.extract_strided_slice %1 {offsets = [0, 42], sizes = [8, 320], strides = [1, 1]} : vector<8x400xf32> to vector<8x320xf32>
    %c32 = arith.constant 32 : index
    %c0_9 = arith.constant 0 : index
    %12 = vector.load %arg9[%c32, %c0_9] : memref<128x320xf32, #tpu.memory_space<vmem>>, vector<8x320xf32>
    tpu.vector_store %arg9[%c32, %c0_9], %11 {strides = array<i32>} : memref<128x320xf32, #tpu.memory_space<vmem>>, vector<8x320xf32>,
    %13 = vector.extract_strided_slice %1 {offsets = [0, 43], sizes = [8, 320], strides = [1, 1]} : vector<8x400xf32> to vector<8x320xf32>
    %c40 = arith.constant 40 : index
    %c0_10 = arith.constant 0 : index
    %14 = vector.load %arg9[%c40, %c0_10] : memref<128x320xf32, #tpu.memory_space<vmem>>, vector<8x320xf32>
    tpu.vector_store %arg9[%c40, %c0_10], %13 {strides = array<i32>} : memref<128x320xf32, #tpu.memory_space<vmem>>, vector<8x320xf32>,
    %15 = vector.extract_strided_slice %1 {offsets = [0, 61], sizes = [8, 320], strides = [1, 1]} : vector<8x400xf32> to vector<8x320xf32>
    %c48 = arith.constant 48 : index
    %c0_11 = arith.constant 0 : index
    %16 = vector.load %arg9[%c48, %c0_11] : memref<128x320xf32, #tpu.memory_space<vmem>>, vector<8x320xf32>
    tpu.vector_store %arg9[%c48, %c0_11], %15 {strides = array<i32>} : memref<128x320xf32, #tpu.memory_space<vmem>>, vector<8x320xf32>,
    %17 = vector.extract_strided_slice %1 {offsets = [0, 62], sizes = [8, 320], strides = [1, 1]} : vector<8x400xf32> to vector<8x320xf32>
    %c56 = arith.constant 56 : index
    %c0_12 = arith.constant 0 : index
    %18 = vector.load %arg9[%c56, %c0_12] : memref<128x320xf32, #tpu.memory_space<vmem>>, vector<8x320xf32>
    tpu.vector_store %arg9[%c56, %c0_12], %17 {strides = array<i32>} : memref<128x320xf32, #tpu.memory_space<vmem>>, vector<8x320xf32>,
    %19 = vector.extract_strided_slice %1 {offsets = [0, 63], sizes = [8, 320], strides = [1, 1]} : vector<8x400xf32> to vector<8x320xf32>
    %c64 = arith.constant 64 : index
    %c0_13 = arith.constant 0 : index
    %20 = vector.load %arg9[%c64, %c0_13] : memref<128x320xf32, #tpu.memory_space<vmem>>, vector<8x320xf32>
    tpu.vector_store %arg9[%c64, %c0_13], %19 {strides = array<i32>} : memref<128x320xf32, #tpu.memory_space<vmem>>, vector<8x320xf32>,
    %cst = arith.constant 0.000000e+00 : f32
    %21 = vector.broadcast %cst : f32 to vector<56x320xf32>
    %c72 = arith.constant 72 : index
    %c0_14 = arith.constant 0 : index
    %22 = vector.load %arg9[%c72, %c0_14] : memref<128x320xf32, #tpu.memory_space<vmem>>, vector<56x320xf32>
    tpu.vector_store %arg9[%c72, %c0_14], %21 {strides = array<i32>} : memref<128x320xf32, #tpu.memory_space<vmem>>, vector<56x320xf32>,
    %c0_15 = arith.constant 0 : index
    %c0_16 = arith.constant 0 : index
    %23 = vector.load %arg2[%c0_15, %c0_16] : memref<8x128xbf16, #tpu.memory_space<vmem>>, vector<8x128xbf16>
    %c0_17 = arith.constant 0 : index
    %c0_18 = arith.constant 0 : index
    %24 = vector.load %arg9[%c0_17, %c0_18] : memref<128x320xf32, #tpu.memory_space<vmem>>, vector<128x320xf32>
    %25 = arith.truncf %24 : vector<128x320xf32> to vector<128x320xbf16>
    %cst_19 = arith.constant dense<0.000000e+00> : vector<8x320xf32>
    %26 = tpu.matmul %23, %25, %cst_19 {dimension_numbers = #tpu.dot_dimension_numbers<[1], [0], [0], [1], [0, 0, 1, 1], [], []>} : vector<8x128xbf16>, vector<128x320xbf16>, vector<8x320xf32> -> vector<8x320xf32>
    %c0_20 = arith.constant 0 : index
    %c0_21 = arith.constant 0 : index
    %27 = vector.load %arg3[%c0_20, %c0_21] : memref<8x1xf32, #tpu.memory_space<vmem>>, vector<8x1xf32>
    %28 = vector.broadcast %27 : vector<8x1xf32> to vector<8x320xf32>
    %29 = arith.addf %26, %28 : vector<8x320xf32>
    %cst_22 = arith.constant 0.000000e+00 : f32
    %30 = vector.broadcast %cst_22 : f32 to vector<8x320xf32>
    %31 = arith.maximumf %29, %30 : vector<8x320xf32>
    %32 = vector.extract_strided_slice %1 {offsets = [0, 42], sizes = [8, 320], strides = [1, 1]} : vector<8x400xf32> to vector<8x320xf32>
    %33 = arith.addf %31, %32 : vector<8x320xf32>
    %cst_23 = arith.constant 0.000000e+00 : f32
    %34 = vector.broadcast %cst_23 : f32 to vector<8x320xf32>
    %35 = arith.maximumf %33, %34 : vector<8x320xf32>
    %cst_24 = arith.constant 0.000000e+00 : f32
    %36 = vector.broadcast %cst_24 : f32 to vector<8x420xf32>
    %c0_25 = arith.constant 0 : index
    %c0_26 = arith.constant 0 : index
    %37 = vector.load %arg8[%c0_25, %c0_26] : memref<8x420xf32, #tpu.memory_space<vmem>>, vector<8x420xf32>
    tpu.vector_store %arg8[%c0_25, %c0_26], %36 {strides = array<i32>} : memref<8x420xf32, #tpu.memory_space<vmem>>, vector<8x420xf32>,
    %38 = vector.broadcast %2 : vector<1x320xf32> to vector<8x320xf32>
    %39 = arith.mulf %35, %38 : vector<8x320xf32>
    %c0_27 = arith.constant 0 : index
    %c42 = arith.constant 42 : index
    %40 = vector.load %arg8[%c0_27, %c42] : memref<8x420xf32, #tpu.memory_space<vmem>>, vector<8x320xf32>
    tpu.vector_store %arg8[%c0_27, %c42], %39 {strides = array<i32>} : memref<8x420xf32, #tpu.memory_space<vmem>>, vector<8x320xf32>,
    %c0_28 = arith.constant 0 : index
    %c0_29 = arith.constant 0 : index
    %41 = vector.load %arg8[%c0_28, %c0_29] : memref<8x420xf32, #tpu.memory_space<vmem>>, vector<8x320xf32>
    %c0_30 = arith.constant 0 : index
    %c0_31 = arith.constant 0 : index
    %42 = vector.load %arg10[%c0_30, %c0_31] : memref<256x320xf32, #tpu.memory_space<vmem>>, vector<8x320xf32>
    tpu.vector_store %arg10[%c0_30, %c0_31], %41 {strides = array<i32>} : memref<256x320xf32, #tpu.memory_space<vmem>>, vector<8x320xf32>,
    %c0_32 = arith.constant 0 : index
    %c1 = arith.constant 1 : index
    %43 = vector.load %arg8[%c0_32, %c1] : memref<8x420xf32, #tpu.memory_space<vmem>>, vector<8x320xf32>
    %c8_33 = arith.constant 8 : index
    %c0_34 = arith.constant 0 : index
    %44 = vector.load %arg10[%c8_33, %c0_34] : memref<256x320xf32, #tpu.memory_space<vmem>>, vector<8x320xf32>
    tpu.vector_store %arg10[%c8_33, %c0_34], %43 {strides = array<i32>} : memref<256x320xf32, #tpu.memory_space<vmem>>, vector<8x320xf32>,
    %c0_35 = arith.constant 0 : index
    %c2 = arith.constant 2 : index
    %45 = vector.load %arg8[%c0_35, %c2] : memref<8x420xf32, #tpu.memory_space<vmem>>, vector<8x320xf32>
    %c16_36 = arith.constant 16 : index
    %c0_37 = arith.constant 0 : index
    %46 = vector.load %arg10[%c16_36, %c0_37] : memref<256x320xf32, #tpu.memory_space<vmem>>, vector<8x320xf32>
    tpu.vector_store %arg10[%c16_36, %c0_37], %45 {strides = array<i32>} : memref<256x320xf32, #tpu.memory_space<vmem>>, vector<8x320xf32>,
    %c0_38 = arith.constant 0 : index
    %c3 = arith.constant 3 : index
    %47 = vector.load %arg8[%c0_38, %c3] : memref<8x420xf32, #tpu.memory_space<vmem>>, vector<8x320xf32>
    %c24_39 = arith.constant 24 : index
    %c0_40 = arith.constant 0 : index
    %48 = vector.load %arg10[%c24_39, %c0_40] : memref<256x320xf32, #tpu.memory_space<vmem>>, vector<8x320xf32>
    tpu.vector_store %arg10[%c24_39, %c0_40], %47 {strides = array<i32>} : memref<256x320xf32, #tpu.memory_space<vmem>>, vector<8x320xf32>,
    %c0_41 = arith.constant 0 : index
    %c4 = arith.constant 4 : index
    %49 = vector.load %arg8[%c0_41, %c4] : memref<8x420xf32, #tpu.memory_space<vmem>>, vector<8x320xf32>
    %c32_42 = arith.constant 32 : index
    %c0_43 = arith.constant 0 : index
    %50 = vector.load %arg10[%c32_42, %c0_43] : memref<256x320xf32, #tpu.memory_space<vmem>>, vector<8x320xf32>
    tpu.vector_store %arg10[%c32_42, %c0_43], %49 {strides = array<i32>} : memref<256x320xf32, #tpu.memory_space<vmem>>, vector<8x320xf32>,
    %c0_44 = arith.constant 0 : index
    %c20 = arith.constant 20 : index
    %51 = vector.load %arg8[%c0_44, %c20] : memref<8x420xf32, #tpu.memory_space<vmem>>, vector<8x320xf32>
    %c40_45 = arith.constant 40 : index
    %c0_46 = arith.constant 0 : index
    %52 = vector.load %arg10[%c40_45, %c0_46] : memref<256x320xf32, #tpu.memory_space<vmem>>, vector<8x320xf32>
    tpu.vector_store %arg10[%c40_45, %c0_46], %51 {strides = array<i32>} : memref<256x320xf32, #tpu.memory_space<vmem>>, vector<8x320xf32>,
    %c0_47 = arith.constant 0 : index
    %c21 = arith.constant 21 : index
    %53 = vector.load %arg8[%c0_47, %c21] : memref<8x420xf32, #tpu.memory_space<vmem>>, vector<8x320xf32>
    %c48_48 = arith.constant 48 : index
    %c0_49 = arith.constant 0 : index
    %54 = vector.load %arg10[%c48_48, %c0_49] : memref<256x320xf32, #tpu.memory_space<vmem>>, vector<8x320xf32>
    tpu.vector_store %arg10[%c48_48, %c0_49], %53 {strides = array<i32>} : memref<256x320xf32, #tpu.memory_space<vmem>>, vector<8x320xf32>,
    %c0_50 = arith.constant 0 : index
    %c22 = arith.constant 22 : index
    %55 = vector.load %arg8[%c0_50, %c22] : memref<8x420xf32, #tpu.memory_space<vmem>>, vector<8x320xf32>
    %c56_51 = arith.constant 56 : index
    %c0_52 = arith.constant 0 : index
    %56 = vector.load %arg10[%c56_51, %c0_52] : memref<256x320xf32, #tpu.memory_space<vmem>>, vector<8x320xf32>
    tpu.vector_store %arg10[%c56_51, %c0_52], %55 {strides = array<i32>} : memref<256x320xf32, #tpu.memory_space<vmem>>, vector<8x320xf32>,
    %c0_53 = arith.constant 0 : index
    %c23 = arith.constant 23 : index
    %57 = vector.load %arg8[%c0_53, %c23] : memref<8x420xf32, #tpu.memory_space<vmem>>, vector<8x320xf32>
    %c64_54 = arith.constant 64 : index
    %c0_55 = arith.constant 0 : index
    %58 = vector.load %arg10[%c64_54, %c0_55] : memref<256x320xf32, #tpu.memory_space<vmem>>, vector<8x320xf32>
    tpu.vector_store %arg10[%c64_54, %c0_55], %57 {strides = array<i32>} : memref<256x320xf32, #tpu.memory_space<vmem>>, vector<8x320xf32>,
    %c0_56 = arith.constant 0 : index
    %c24_57 = arith.constant 24 : index
    %59 = vector.load %arg8[%c0_56, %c24_57] : memref<8x420xf32, #tpu.memory_space<vmem>>, vector<8x320xf32>
    %c72_58 = arith.constant 72 : index
    %c0_59 = arith.constant 0 : index
    %60 = vector.load %arg10[%c72_58, %c0_59] : memref<256x320xf32, #tpu.memory_space<vmem>>, vector<8x320xf32>
    tpu.vector_store %arg10[%c72_58, %c0_59], %59 {strides = array<i32>} : memref<256x320xf32, #tpu.memory_space<vmem>>, vector<8x320xf32>,
    %c0_60 = arith.constant 0 : index
    %c40_61 = arith.constant 40 : index
    %61 = vector.load %arg8[%c0_60, %c40_61] : memref<8x420xf32, #tpu.memory_space<vmem>>, vector<8x320xf32>
    %c80 = arith.constant 80 : index
    %c0_62 = arith.constant 0 : index
    %62 = vector.load %arg10[%c80, %c0_62] : memref<256x320xf32, #tpu.memory_space<vmem>>, vector<8x320xf32>
    tpu.vector_store %arg10[%c80, %c0_62], %61 {strides = array<i32>} : memref<256x320xf32, #tpu.memory_space<vmem>>, vector<8x320xf32>,
    %c0_63 = arith.constant 0 : index
    %c41 = arith.constant 41 : index
    %63 = vector.load %arg8[%c0_63, %c41] : memref<8x420xf32, #tpu.memory_space<vmem>>, vector<8x320xf32>
    %c88 = arith.constant 88 : index
    %c0_64 = arith.constant 0 : index
    %64 = vector.load %arg10[%c88, %c0_64] : memref<256x320xf32, #tpu.memory_space<vmem>>, vector<8x320xf32>
    tpu.vector_store %arg10[%c88, %c0_64], %63 {strides = array<i32>} : memref<256x320xf32, #tpu.memory_space<vmem>>, vector<8x320xf32>,
    %c0_65 = arith.constant 0 : index
    %c42_66 = arith.constant 42 : index
    %65 = vector.load %arg8[%c0_65, %c42_66] : memref<8x420xf32, #tpu.memory_space<vmem>>, vector<8x320xf32>
    %c96 = arith.constant 96 : index
    %c0_67 = arith.constant 0 : index
    %66 = vector.load %arg10[%c96, %c0_67] : memref<256x320xf32, #tpu.memory_space<vmem>>, vector<8x320xf32>
    tpu.vector_store %arg10[%c96, %c0_67], %65 {strides = array<i32>} : memref<256x320xf32, #tpu.memory_space<vmem>>, vector<8x320xf32>,
    %c0_68 = arith.constant 0 : index
    %c43 = arith.constant 43 : index
    %67 = vector.load %arg8[%c0_68, %c43] : memref<8x420xf32, #tpu.memory_space<vmem>>, vector<8x320xf32>
    %c104 = arith.constant 104 : index
    %c0_69 = arith.constant 0 : index
    %68 = vector.load %arg10[%c104, %c0_69] : memref<256x320xf32, #tpu.memory_space<vmem>>, vector<8x320xf32>
    tpu.vector_store %arg10[%c104, %c0_69], %67 {strides = array<i32>} : memref<256x320xf32, #tpu.memory_space<vmem>>, vector<8x320xf32>,
    %c0_70 = arith.constant 0 : index
    %c44 = arith.constant 44 : index
    %69 = vector.load %arg8[%c0_70, %c44] : memref<8x420xf32, #tpu.memory_space<vmem>>, vector<8x320xf32>
    %c112 = arith.constant 112 : index
    %c0_71 = arith.constant 0 : index
    %70 = vector.load %arg10[%c112, %c0_71] : memref<256x320xf32, #tpu.memory_space<vmem>>, vector<8x320xf32>
    tpu.vector_store %arg10[%c112, %c0_71], %69 {strides = array<i32>} : memref<256x320xf32, #tpu.memory_space<vmem>>, vector<8x320xf32>,
    %c0_72 = arith.constant 0 : index
    %c60 = arith.constant 60 : index
    %71 = vector.load %arg8[%c0_72, %c60] : memref<8x420xf32, #tpu.memory_space<vmem>>, vector<8x320xf32>
    %c120 = arith.constant 120 : index
    %c0_73 = arith.constant 0 : index
    %72 = vector.load %arg10[%c120, %c0_73] : memref<256x320xf32, #tpu.memory_space<vmem>>, vector<8x320xf32>
    tpu.vector_store %arg10[%c120, %c0_73], %71 {strides = array<i32>} : memref<256x320xf32, #tpu.memory_space<vmem>>, vector<8x320xf32>,
    %c0_74 = arith.constant 0 : index
    %c61 = arith.constant 61 : index
    %73 = vector.load %arg8[%c0_74, %c61] : memref<8x420xf32, #tpu.memory_space<vmem>>, vector<8x320xf32>
    %c128 = arith.constant 128 : index
    %c0_75 = arith.constant 0 : index
    %74 = vector.load %arg10[%c128, %c0_75] : memref<256x320xf32, #tpu.memory_space<vmem>>, vector<8x320xf32>
    tpu.vector_store %arg10[%c128, %c0_75], %73 {strides = array<i32>} : memref<256x320xf32, #tpu.memory_space<vmem>>, vector<8x320xf32>,
    %c0_76 = arith.constant 0 : index
    %c62 = arith.constant 62 : index
    %75 = vector.load %arg8[%c0_76, %c62] : memref<8x420xf32, #tpu.memory_space<vmem>>, vector<8x320xf32>
    %c136 = arith.constant 136 : index
    %c0_77 = arith.constant 0 : index
    %76 = vector.load %arg10[%c136, %c0_77] : memref<256x320xf32, #tpu.memory_space<vmem>>, vector<8x320xf32>
    tpu.vector_store %arg10[%c136, %c0_77], %75 {strides = array<i32>} : memref<256x320xf32, #tpu.memory_space<vmem>>, vector<8x320xf32>,
    %c0_78 = arith.constant 0 : index
    %c63 = arith.constant 63 : index
    %77 = vector.load %arg8[%c0_78, %c63] : memref<8x420xf32, #tpu.memory_space<vmem>>, vector<8x320xf32>
    %c144 = arith.constant 144 : index
    %c0_79 = arith.constant 0 : index
    %78 = vector.load %arg10[%c144, %c0_79] : memref<256x320xf32, #tpu.memory_space<vmem>>, vector<8x320xf32>
    tpu.vector_store %arg10[%c144, %c0_79], %77 {strides = array<i32>} : memref<256x320xf32, #tpu.memory_space<vmem>>, vector<8x320xf32>,
    %c0_80 = arith.constant 0 : index
    %c64_81 = arith.constant 64 : index
    %79 = vector.load %arg8[%c0_80, %c64_81] : memref<8x420xf32, #tpu.memory_space<vmem>>, vector<8x320xf32>
    %c152 = arith.constant 152 : index
    %c0_82 = arith.constant 0 : index
    %80 = vector.load %arg10[%c152, %c0_82] : memref<256x320xf32, #tpu.memory_space<vmem>>, vector<8x320xf32>
    tpu.vector_store %arg10[%c152, %c0_82], %79 {strides = array<i32>} : memref<256x320xf32, #tpu.memory_space<vmem>>, vector<8x320xf32>,
    %c0_83 = arith.constant 0 : index
    %c80_84 = arith.constant 80 : index
    %81 = vector.load %arg8[%c0_83, %c80_84] : memref<8x420xf32, #tpu.memory_space<vmem>>, vector<8x320xf32>
    %c160 = arith.constant 160 : index
    %c0_85 = arith.constant 0 : index
    %82 = vector.load %arg10[%c160, %c0_85] : memref<256x320xf32, #tpu.memory_space<vmem>>, vector<8x320xf32>
    tpu.vector_store %arg10[%c160, %c0_85], %81 {strides = array<i32>} : memref<256x320xf32, #tpu.memory_space<vmem>>, vector<8x320xf32>,
    %c0_86 = arith.constant 0 : index
    %c81 = arith.constant 81 : index
    %83 = vector.load %arg8[%c0_86, %c81] : memref<8x420xf32, #tpu.memory_space<vmem>>, vector<8x320xf32>
    %c168 = arith.constant 168 : index
    %c0_87 = arith.constant 0 : index
    %84 = vector.load %arg10[%c168, %c0_87] : memref<256x320xf32, #tpu.memory_space<vmem>>, vector<8x320xf32>
    tpu.vector_store %arg10[%c168, %c0_87], %83 {strides = array<i32>} : memref<256x320xf32, #tpu.memory_space<vmem>>, vector<8x320xf32>,
    %c0_88 = arith.constant 0 : index
    %c82 = arith.constant 82 : index
    %85 = vector.load %arg8[%c0_88, %c82] : memref<8x420xf32, #tpu.memory_space<vmem>>, vector<8x320xf32>
    %c176 = arith.constant 176 : index
    %c0_89 = arith.constant 0 : index
    %86 = vector.load %arg10[%c176, %c0_89] : memref<256x320xf32, #tpu.memory_space<vmem>>, vector<8x320xf32>
    tpu.vector_store %arg10[%c176, %c0_89], %85 {strides = array<i32>} : memref<256x320xf32, #tpu.memory_space<vmem>>, vector<8x320xf32>,
    %c0_90 = arith.constant 0 : index
    %c83 = arith.constant 83 : index
    %87 = vector.load %arg8[%c0_90, %c83] : memref<8x420xf32, #tpu.memory_space<vmem>>, vector<8x320xf32>
    %c184 = arith.constant 184 : index
    %c0_91 = arith.constant 0 : index
    %88 = vector.load %arg10[%c184, %c0_91] : memref<256x320xf32, #tpu.memory_space<vmem>>, vector<8x320xf32>
    tpu.vector_store %arg10[%c184, %c0_91], %87 {strides = array<i32>} : memref<256x320xf32, #tpu.memory_space<vmem>>, vector<8x320xf32>,
    %c0_92 = arith.constant 0 : index
    %c84 = arith.constant 84 : index
    %89 = vector.load %arg8[%c0_92, %c84] : memref<8x420xf32, #tpu.memory_space<vmem>>, vector<8x320xf32>
    %c192 = arith.constant 192 : index
    %c0_93 = arith.constant 0 : index
    %90 = vector.load %arg10[%c192, %c0_93] : memref<256x320xf32, #tpu.memory_space<vmem>>, vector<8x320xf32>
    tpu.vector_store %arg10[%c192, %c0_93], %89 {strides = array<i32>} : memref<256x320xf32, #tpu.memory_space<vmem>>, vector<8x320xf32>,
    %cst_94 = arith.constant 0.000000e+00 : f32
    %91 = vector.broadcast %cst_94 : f32 to vector<56x320xf32>
    %c200 = arith.constant 200 : index
    %c0_95 = arith.constant 0 : index
    %92 = vector.load %arg10[%c200, %c0_95] : memref<256x320xf32, #tpu.memory_space<vmem>>, vector<56x320xf32>
    tpu.vector_store %arg10[%c200, %c0_95], %91 {strides = array<i32>} : memref<256x320xf32, #tpu.memory_space<vmem>>, vector<56x320xf32>,
    %c0_96 = arith.constant 0 : index
    %c0_97 = arith.constant 0 : index
    %93 = vector.load %arg4[%c0_96, %c0_97] : memref<8x256xbf16, #tpu.memory_space<vmem>>, vector<8x256xbf16>
    %c0_98 = arith.constant 0 : index
    %c0_99 = arith.constant 0 : index
    %94 = vector.load %arg10[%c0_98, %c0_99] : memref<256x320xf32, #tpu.memory_space<vmem>>, vector<256x320xf32>
    %95 = arith.truncf %94 : vector<256x320xf32> to vector<256x320xbf16>
    %cst_100 = arith.constant dense<0.000000e+00> : vector<8x320xf32>
    %96 = tpu.matmul %93, %95, %cst_100 {dimension_numbers = #tpu.dot_dimension_numbers<[1], [0], [0], [1], [0, 0, 1, 1], [], []>} : vector<8x256xbf16>, vector<256x320xbf16>, vector<8x320xf32> -> vector<8x320xf32>
    %c0_101 = arith.constant 0 : index
    %c0_102 = arith.constant 0 : index
    %97 = vector.load %arg5[%c0_101, %c0_102] : memref<8x1xf32, #tpu.memory_space<vmem>>, vector<8x1xf32>
    %98 = vector.broadcast %97 : vector<8x1xf32> to vector<8x320xf32>
    %99 = arith.addf %96, %98 : vector<8x320xf32>
    %cst_103 = arith.constant 0.000000e+00 : f32
    %100 = vector.broadcast %cst_103 : f32 to vector<8x320xf32>
    %101 = arith.maximumf %99, %100 : vector<8x320xf32>
    %102 = arith.addf %101, %35 : vector<8x320xf32>
    %cst_104 = arith.constant 0.000000e+00 : f32
    %103 = vector.broadcast %cst_104 : f32 to vector<8x320xf32>
    %104 = arith.maximumf %102, %103 : vector<8x320xf32>
    %c0_105 = arith.constant 0 : index
    %c0_106 = arith.constant 0 : index
    %c0_107 = arith.constant 0 : index
    %105 = vector.load %arg7[%c0_105, %c0_106, %c0_107] : memref<1x8x320xf32, #tpu.memory_space<vmem>>, vector<1x8x320xf32>
    %106 = vector.shape_cast %105 : vector<1x8x320xf32> to vector<8x320xf32>
    %107 = vector.shape_cast %104 : vector<8x320xf32> to vector<1x8x320xf32>
    tpu.vector_store %arg7[%c0_105, %c0_106, %c0_107], %107 {strides = array<i32>} : memref<1x8x320xf32, #tpu.memory_space<vmem>>, vector<1x8x320xf32>,
    return
  }
  func.func @transform_0(%arg0: i32) -> (i32, i32, i32) {
    %c0_i32 = arith.constant 0 : i32
    %c0_i32_0 = arith.constant 0 : i32
    %c0_i32_1 = arith.constant 0 : i32
    return %arg0, %c0_i32, %c0_i32_0 : i32, i32, i32
  }
  func.func @transform_1(%arg0: i32) -> (i32, i32) {
    %c0_i32 = arith.constant 0 : i32
    %c0_i32_0 = arith.constant 0 : i32
    %c0_i32_1 = arith.constant 0 : i32
    return %c0_i32, %c0_i32_0 : i32, i32
  }
  func.func @transform_2(%arg0: i32) -> (i32, i32) {
    %c0_i32 = arith.constant 0 : i32
    %c0_i32_0 = arith.constant 0 : i32
    %c0_i32_1 = arith.constant 0 : i32
    return %c0_i32, %c0_i32_0 : i32, i32
  }
  func.func @transform_3(%arg0: i32) -> (i32, i32) {
    %c0_i32 = arith.constant 0 : i32
    %c0_i32_0 = arith.constant 0 : i32
    %c0_i32_1 = arith.constant 0 : i32
    return %c0_i32, %c0_i32_0 : i32, i32
  }
  func.func @transform_4(%arg0: i32) -> (i32, i32) {
    %c0_i32 = arith.constant 0 : i32
    %c0_i32_0 = arith.constant 0 : i32
    %c0_i32_1 = arith.constant 0 : i32
    return %c0_i32, %c0_i32_0 : i32, i32
  }
  func.func @transform_5(%arg0: i32) -> (i32, i32) {
    %c0_i32 = arith.constant 0 : i32
    %c0_i32_0 = arith.constant 0 : i32
    %c0_i32_1 = arith.constant 0 : i32
    return %c0_i32, %c0_i32_0 : i32, i32
  }
  func.func @transform_6(%arg0: i32) -> (i32, i32, i32) {
    %c0_i32 = arith.constant 0 : i32
    %c0_i32_0 = arith.constant 0 : i32
    %c0_i32_1 = arith.constant 0 : i32
    return %arg0, %c0_i32, %c0_i32_0 : i32, i32, i32
  }
}

</mosaic_0001>

<bundles_post_ra>
// kernel: mkrb_forward.1
= control target key start
LH: loop header
LB: loop body
LE: loop exit
PB: predicated region body
PF: predicated region fallthrough
CT: control target
= control target key end

     0   :  { %s1659_s21 = smov 0   ;;  %s2124_s0 = inlined_call_operand.vmem [shape: f32[2,8,400], index: 0, kind: input, shape index: {}]   ;;  %s2125_s1 = inlined_call_operand.vmem [shape: bf16[8,128], index: 1, kind: input, shape index: {}]   ;;  %s2126_s2 = inlined_call_operand.vmem [shape: f32[8,1], index: 2, kind: input, shape index: {}]   ;;  %s2127_s3 = inlined_call_operand.vmem [shape: bf16[8,256], index: 3, kind: input, shape index: {}]   ;;  %s2128_s4 = inlined_call_operand.vmem [shape: f32[8,1], index: 4, kind: input, shape index: {}]   ;;  %s2129_s5 = inlined_call_operand.vmem [shape: f32[1,320], index: 5, kind: input, shape index: {}]   ;;  %s2130_s6 = inlined_call_operand.vmem [shape: f32[2,8,320], index: 6, kind: output, shape index: {}]  }
   0x1 LB: > { %s1481_s22 = sadd.s32 4294967295, %s1593_s21   ;;  %p1485_p0 = scmp.ge.s32.totalorder %s1593_s21, 1  ;;  %s1593_s21 = sphi %s1659_s21, %s16_s21  }
   0x2   : > { %p212_p1 = scmp.lt.s32.totalorder %s1593_s21, 3 }
   0x4   : > { %p213_p2 = pnand %p1485_p0, %p212_p1 }
   0x5   : > { %p242_p3 = scmp.lt.s32.totalorder (!%p213_p2), %s1481_s22, 1  ;;  %vm274_vm0 = vcmask (!%p213_p2), 523264   ;;  %s1595_s27 = smov (!%p213_p2), 106   ;;  %v1597_v1 = vmov (!%p213_p2), 0.0   ;;  %v1605_v4 = vmov (!%p213_p2), 0   ;;  %vm1606_vm1 = vmmov (!%p213_p2), 0  }
   0x6   : > { %216 = sbr.rel (%p213_p2) target bundleno = 1064 (0x428), region = 44  ;;  %s1596_s28 = smov (!%p213_p2), 107   ;;  %396 = vst [vmem:[#allocation3 + $0xd8] sm:$0xff] (!%p213_p2), %v1597_v1  ;;  %398 = vst.msk [vmem:[#allocation3 + $0xe8] sm:$0xff] (!%p213_p2), %vm274_vm0, %v1597_v1  ;;  %1525 = vmatprep.subr.bf16.mxu1 (!%p213_p2), %v1597_v1  ;;  %528 = vmatprep.mubr.bf16.mxu0 (!%p213_p2), %v1605_v4  ;;  %v490_v5 = vld [vmem:[%s2126_s2] sm:$0xff] (!%p213_p2)  ;;  %vm282_vm2 = vcmask (!%p213_p2), 867328  }
   0x7   : > { %401 = vst.msk [vmem:[#allocation3 + $0x100] sm:$0xff] (!%p213_p2), %vm274_vm0, %v1597_v1  ;;  %404 = vst.msk [vmem:[#allocation3 + $0x118] sm:$0xff] (!%p213_p2), %vm274_vm0, %v1597_v1  ;;  %s1598_s29 = smov (!%p213_p2), 105   ;;  %s1599_s30 = smov (!%p213_p2), 87   ;;  %1582 = vset.pattern.permute.xlu1 (!%p213_p2), %v1605_v4  ;;  %1583 = vset.pattern.permute.xlu0 (!%p213_p2), %v1605_v4  ;;  %vm266_vm3 = vcmask (!%p213_p2), 875520   ;;  %vm297_vm4 = vcmask (!%p213_p2), 859136  }
   0x8   : > { %407 = vst.msk [vmem:[#allocation3 + $0x130] sm:$0xff] (!%p213_p2), %vm274_vm0, %v1597_v1  ;;  %410 = vst.msk [vmem:[#allocation3 + $0x148] sm:$0xff] (!%p213_p2), %vm274_vm0, %v1597_v1  ;;  %s1600_s7 = smov (!%p213_p2), 86   ;;  %s1601_s8 = smov (!%p213_p2), 85   ;;  %1541 = vmatprep.mubr.msk.bf16.mxu1 (!%p213_p2), %vm1606_vm1, %v1597_v1  ;;  %vm312_vm5 = vcmask (!%p213_p2), 711680   ;;  %vm327_vm6 = vcmask (!%p213_p2), 703488  }
   0x9   : > { %413 = vst.msk [vmem:[#allocation3 + $0x160] sm:$0xff] (!%p213_p2), %vm274_vm0, %v1597_v1  ;;  %416 = vst.msk [vmem:[#allocation3 + $0x178] sm:$0xff] (!%p213_p2), %vm274_vm0, %v1597_v1  ;;  %s1602_s9 = smov (!%p213_p2), 67   ;;  %s1603_s10 = smov (!%p213_p2), 66   ;;  %vm342_vm7 = vcmask (!%p213_p2), 695296   ;;  %vm357_vm8 = vcmask (!%p213_p2), 547840  }
   0xa   : > { %586 = vst [vmem:[#allocation2] sm:$0xff] (!%p213_p2), %v1597_v1  ;;  %588 = vst [vmem:[#allocation2 + $0x10] sm:$0xff] (!%p213_p2), %v1597_v1  ;;  %s1604_s11 = smov (!%p213_p2), 65   ;;  %vm372_vm9 = vcmask (!%p213_p2), 539648   ;;  %vm387_vm10 = vcmask (!%p213_p2), 531456   ;;  %vm589_vm11 = vcmask (!%p213_p2), 293888  }
   0xb   : > { %1156 = vst.msk [vmem:[#allocation4 + $0x268] sm:$0xff] (!%p213_p2), %vm274_vm0, %v1597_v1  ;;  %1159 = vst.msk [vmem:[#allocation4 + $0x280] sm:$0xff] (!%p213_p2), %vm274_vm0, %v1597_v1  ;;  %s1608_s16 = smov (!%p213_p2), 48   ;;  %s1609_s17 = smov (!%p213_p2), 47   ;;  %vm619_vm12 = vcmask (!%p213_p2), 343040   ;;  %vm625_vm13 = vcmask (!%p213_p2), 1047888  }
   0xc   : > { %1162 = vst.msk [vmem:[#allocation4 + $0x298] sm:$0xff] (!%p213_p2), %vm274_vm0, %v1597_v1  ;;  %1165 = vst.msk [vmem:[#allocation4 + $0x2b0] sm:$0xff] (!%p213_p2), %vm274_vm0, %v1597_v1  ;;  %s1610_s18 = smov (!%p213_p2), 46   ;;  %s1611_s19 = smov (!%p213_p2), 45   ;;  %vm668_vm14 = vcmask (!%p213_p2), 1031168   ;;  %vm647_vm15 = vcmask (!%p213_p2), 1039360  }
   0xd   : > { %s2135_s22 = smov (!%p242_p3, %s1481_s22), 1  ;;  %1168 = vst.msk [vmem:[#allocation4 + $0x2c8] sm:$0xff] %vm274_vm0, %v1597_v1  ;;  %1171 = vst.msk [vmem:[#allocation4 + $0x2e0] sm:$0xff] %vm274_vm0, %v1597_v1  ;;  %s1612_s24 = smov 42   ;;  %vm689_vm1 = vcmask 1022976  }
   0xe   : > { %s1493_s23 = sshll.u32 %s2135_s22, 5  ;;  %1174 = vst.msk [vmem:[#allocation4 + $0x2f8] sm:$0xff] %vm274_vm0, %v1597_v1  ;;  %s1613_s25 = smov 126  }
   0xf   : > { %s246_s26 = scalar_lea.vmem %s2124_s0, %s1493_s23  ;;  %590 = vst.msk [vmem:[#allocation2 + $0x18] sm:$0xff] %vm589_vm11, %v1597_v1  ;;  %s1615_s12 = smov 124   ;;  %vm710_vm11 = vcmask 1014784  }
  0x10   : > { %v254_v0 = vld [vmem:[%s246_s26 + $0x8] sm:$0xff]  ;;  %v255_v2 = vld [vmem:[%s246_s26 + $0x10] sm:$0xff]  ;;  %v253_v3 = vld [vmem:[%s246_s26] sm:$0xff]  ;;  %s1614_s26 = smov 127   ;;  %s1616_s13 = smov 125  }
  0x11   : > { %278 = vrot.lane.b32.xlu1 %v254_v0, %s1595_s27  ;;  %262 = vrot.lane.b32.xlu0 %v254_v0, %s1596_s28  ;;  %s1617_s14 = smov 108   ;;  %s1618_s15 = smov 88  }
  0x12   : > { %s1619_s20 = smov 104   ;;  %s2131_s23 = smov 84  }
  0x15   : > { %280 = vrot.lane.b32.xlu1 %v255_v2, %s1595_s27  ;;  %264 = vrot.lane.b32.xlu0 %v255_v2, %s1596_s28 }
  0x19   : > { %276 = vrot.lane.b32.xlu1 %v253_v3, %s1595_s27  ;;  %260 = vrot.lane.b32.xlu0 %v253_v3, %s1596_s28 }
  0x1d   : > { %295 = vrot.lane.b32.xlu1 %v255_v2, %s1598_s29  ;;  %293 = vrot.lane.b32.xlu0 %v254_v0, %s1598_s29 }
  0x21   : > { %310 = vrot.lane.b32.xlu1 %v255_v2, %s1599_s30  ;;  %308 = vrot.lane.b32.xlu0 %v254_v0, %s1599_s30 }
  0x25   : > { %306 = vrot.lane.b32.xlu1 %v253_v3, %s1599_s30  ;;  %291 = vrot.lane.b32.xlu0 %v253_v3, %s1598_s29 }
  0x29   : > { %325 = vrot.lane.b32.xlu1 %v255_v2, %s1600_s7  ;;  %323 = vrot.lane.b32.xlu0 %v254_v0, %s1600_s7 }
  0x2d   : > { %340 = vrot.lane.b32.xlu1 %v255_v2, %s1601_s8  ;;  %338 = vrot.lane.b32.xlu0 %v254_v0, %s1601_s8 }
  0x31   : > { %336 = vrot.lane.b32.xlu1 %v253_v3, %s1601_s8  ;;  %321 = vrot.lane.b32.xlu0 %v253_v3, %s1600_s7 }
  0x35   : > { %355 = vrot.lane.b32.xlu1 %v255_v2, %s1602_s9  ;;  %353 = vrot.lane.b32.xlu0 %v254_v0, %s1602_s9 }
  0x39   : > { %370 = vrot.lane.b32.xlu1 %v255_v2, %s1603_s10  ;;  %368 = vrot.lane.b32.xlu0 %v254_v0, %s1603_s10 }
  0x3d   : > { %366 = vrot.lane.b32.xlu1 %v253_v3, %s1603_s10  ;;  %351 = vrot.lane.b32.xlu0 %v253_v3, %s1602_s9 }
  0x41   : > { %385 = vrot.lane.b32.xlu1 %v255_v2, %s1604_s11  ;;  %383 = vrot.lane.b32.xlu0 %v254_v0, %s1604_s11 }
  0x45   : > { %381 = vrot.lane.b32.xlu0 %v253_v3, %s1604_s11  ;;  %493 = vperm.xlu1 %1582, %v490_v5  }
  0x83   : > { %v279_v6 = vpop.permute.xlu1 %278  ;;  %v263_v7 = vpop.permute.xlu0 %262 }
  0x87   : > { %v281_v8 = vpop.permute.xlu1 %280  ;;  %v265_v9 = vpop.permute.xlu0 %264 }
  0x88   : > { %v284_v10 = vsel %vm282_vm2, %v279_v6, %v281_v8  ;;  %290 = vst.msk [vmem:[#allocation3 + $0x28] sm:$0xff] %vm274_vm0, %v281_v8  ;;  %v268_v11 = vsel %vm266_vm3, %v263_v7, %v265_v9  ;;  %275 = vst.msk [vmem:[#allocation3 + $0x10] sm:$0xff] %vm274_vm0, %v265_v9  ;;  %v447_v9 = vld [vmem:[#allocation3 + $0xe8] sm:$0xff] }
  0x89   : > { %v467_v12 = vpack.c.bf16 %v284_v10, %v268_v11 }
  0x8b   : > { %v277_v13 = vpop.permute.xlu1 %276  ;;  %v261_v14 = vpop.permute.xlu0 %260  ;;  %496 = vmatprep.subr.bf16.mxu0 %v467_v12  ;;  %v450_v12 = vld [vmem:[#allocation3 + $0x100] sm:$0xff] }
  0x8c   : > { %v283_v15 = vsel %vm282_vm2, %v277_v13, %v279_v6  ;;  %v267_v16 = vsel %vm266_vm3, %v261_v14, %v263_v7  ;;  %v453_v13 = vld [vmem:[#allocation3 + $0x118] sm:$0xff] }
  0x8d   : > { %v466_v17 = vpack.c.bf16 %v283_v15, %v267_v16  ;;  %v1607_v15 = vmov 0.0|0.0   ;;  %v483_v16 = vpack.c.bf16 %v453_v13, %v450_v12 }
  0x8f   : > { %v296_v18 = vpop.permute.xlu1 %295  ;;  %v294_v19 = vpop.permute.xlu0 %293  ;;  %v420_v20 = vld [vmem:[#allocation3 + $0x10] sm:$0xff]  ;;  %v423_v21 = vld [vmem:[#allocation3 + $0x28] sm:$0xff]  ;;  %497 = vmatpush1.bf16.msra.mxu0 %v466_v17 }
  0x90   : > { %305 = vst.msk [vmem:[#allocation3 + $0x40] sm:$0xff] %vm274_vm0, %v296_v18  ;;  %v299_v22 = vsel %vm297_vm4, %v294_v19, %v296_v18  ;;  %v468_v23 = vpack.c.bf16 %v423_v21, %v420_v20  ;;  %v456_v17 = vld [vmem:[#allocation3 + $0x130] sm:$0xff]  ;;  %v459_v18 = vld [vmem:[#allocation3 + $0x148] sm:$0xff]  ;;  %v462_v20 = vld [vmem:[#allocation3 + $0x160] sm:$0xff] }
  0x91   : > { %v465_v21 = vld [vmem:[#allocation3 + $0x178] sm:$0xff] }
  0x92   : > { %1526 = vmatpush3.bf16.msra.mxu1 %v468_v23  ;;  %v417_v23 = vld [vmem:[%s2125_s1] sm:$0xf] }
  0x93   : > { %v311_v24 = vpop.permute.xlu1 %310  ;;  %v309_v25 = vpop.permute.xlu0 %308  ;;  %1527 = vmatprep.subr.bf16.mxu1 %v1597_v1 }
  0x94   : > { %320 = vst.msk [vmem:[#allocation3 + $0x58] sm:$0xff] %vm274_vm0, %v311_v24  ;;  %v314_v26 = vsel %vm312_vm5, %v309_v25, %v311_v24  ;;  %v1786_v24 = vld [vmem:[#allocation2 + $0x18] sm:$0xff] }
  0x95   : > { %v470_v27 = vpack.c.bf16 %v314_v26, %v299_v22  ;;  %v489_v22 = vpack.c.bf16 %v465_v21, %v462_v20  ;;  %1038 = vrot.lane.b32.xlu1 %v1786_v24, %s1608_s16 }
  0x97   : > { %v307_v28 = vpop.permute.xlu1 %306  ;;  %v292_v29 = vpop.permute.xlu0 %291  ;;  %498 = vmatprep.subr.bf16.mxu0 %v470_v27  ;;  %v426_v35 = vld [vmem:[#allocation3 + $0x40] sm:$0xff] }
  0x98   : > { %v313_v30 = vsel %vm312_vm5, %v307_v28, %v309_v25  ;;  %v298_v31 = vsel %vm297_vm4, %v292_v29, %v294_v19  ;;  %v486_v19 = vpack.c.bf16 %v459_v18, %v456_v17  ;;  %v592_v25 = vlaneseq }
  0x99   : > { %v469_v32 = vpack.c.bf16 %v313_v30, %v298_v31  ;;  %1064 = vrot.lane.b32.xlu1 %v1786_v24, %s1609_s17 }
  0x9a   : > { %v593_v26 = vshrl.u32 %v592_v25, 7  ;;  %v2013_v25 = vld [vmem:[%s2127_s3] sm:$0xff] }
  0x9b   : > { %v1749_v33 = vpop.permute.xlu1 %325  ;;  %v324_v34 = vpop.permute.xlu0 %323  ;;  %v429_v36 = vld [vmem:[#allocation3 + $0x58] sm:$0xff]  ;;  %499 = vmatpush1.bf16.msra.mxu0 %v469_v32 }
  0x9c   : > { %335 = vst.msk [vmem:[#allocation3 + $0x70] sm:$0xff] %vm274_vm0, %v1749_v33  ;;  %v1755_v37 = vsel %vm327_vm6, %v324_v34, %v1749_v33  ;;  %v471_v38 = vpack.c.bf16 %v429_v36, %v426_v35  ;;  %v598_v32 = vsub.s32 1, %v593_v26  ;;  %v256_v36 = vld [vmem:[%s2129_s5] sm:$0x7] }
  0x9d   : > { %1090 = vrot.lane.b32.xlu1 %v1786_v24, %s1610_s18 }
  0x9e   : > { %1528 = vmatpush3.bf16.msra.mxu1 %v471_v38 }
  0x9f   : > { %v341_v39 = vpop.permute.xlu1 %340  ;;  %v339_v40 = vpop.permute.xlu0 %338  ;;  %1529 = vmatprep.subr.bf16.mxu1 %v1597_v1 }
  0xa0   : > { %350 = vst.msk [vmem:[#allocation3 + $0x88] sm:$0xff] %vm274_vm0, %v341_v39  ;;  %v344_v41 = vsel %vm342_vm7, %v339_v40, %v341_v39 }
  0xa1   : > { %v473_v42 = vpack.c.bf16 %v344_v41, %v1755_v37  ;;  %1116 = vrot.lane.b32.xlu1 %v1786_v24, %s1611_s19 }
  0xa3   : > { %v337_v43 = vpop.permute.xlu1 %336  ;;  %v322_v44 = vpop.permute.xlu0 %321  ;;  %500 = vmatprep.subr.bf16.mxu0 %v473_v42  ;;  %v432_v50 = vld [vmem:[#allocation3 + $0x70] sm:$0xff]  ;;  %v602_v42 = vsub.s32 2, %v593_v26 }
  0xa4   : > { %v343_v45 = vsel %vm342_vm7, %v337_v43, %v339_v40  ;;  %v1763_v46 = vsel %vm327_vm6, %v322_v44, %v324_v34 }
  0xa5   : > { %v472_v47 = vpack.c.bf16 %v343_v45, %v1763_v46 }
  0xa7   : > { %v356_v48 = vpop.permute.xlu1 %355  ;;  %v354_v49 = vpop.permute.xlu0 %353  ;;  %v435_v51 = vld [vmem:[#allocation3 + $0x88] sm:$0xff]  ;;  %501 = vmatpush1.bf16.msra.mxu0 %v472_v47 }
  0xa8   : > { %365 = vst.msk [vmem:[#allocation3 + $0xa0] sm:$0xff] %vm274_vm0, %v356_v48  ;;  %v359_v52 = vsel %vm357_vm8, %v354_v49, %v356_v48  ;;  %v474_v53 = vpack.c.bf16 %v435_v51, %v432_v50  ;;  %v599_v48 = vrot.slane %v256_v36, %v598_v32 }
  0xaa   : > { %1530 = vmatpush3.bf16.msra.mxu1 %v474_v53  ;;  %v603_v53 = vrot.slane %v256_v36, %v602_v42 }
  0xab   : > { %v371_v54 = vpop.permute.xlu1 %370  ;;  %v369_v55 = vpop.permute.xlu0 %368  ;;  %1531 = vmatprep.subr.bf16.mxu1 %v1597_v1 }
  0xac   : > { %380 = vst.msk [vmem:[#allocation3 + $0xb8] sm:$0xff] %vm274_vm0, %v371_v54  ;;  %v374_v56 = vsel %vm372_vm9, %v369_v55, %v371_v54 }
  0xad   : > { %v476_v57 = vpack.c.bf16 %v374_v56, %v359_v52 }
  0xaf   : > { %v367_v58 = vpop.permute.xlu1 %366  ;;  %v352_v59 = vpop.permute.xlu0 %351  ;;  %502 = vmatprep.subr.bf16.mxu0 %v476_v57  ;;  %v438_v2 = vld [vmem:[#allocation3 + $0xa0] sm:$0xff] }
  0xb0   : > { %v373_v60 = vsel %vm372_vm9, %v367_v58, %v369_v55  ;;  %v358_v61 = vsel %vm357_vm8, %v352_v59, %v354_v49  ;;  %v594_v49 = vsub.s32 0, %v593_v26 }
  0xb1   : > { %v475_v62 = vpack.c.bf16 %v373_v60, %v358_v61 }
  0xb2   : > { %v595_v57 = vrot.slane %v256_v36, %v594_v49 }
  0xb3   : > { %v386_v63 = vpop.permute.xlu1 %385  ;;  %v384_v0 = vpop.permute.xlu0 %383  ;;  %v441_v3 = vld [vmem:[#allocation3 + $0xb8] sm:$0xff]  ;;  %503 = vmatpush1.bf16.msra.mxu0 %v475_v62 }
  0xb4   : > { %395 = vst.msk [vmem:[#allocation3 + $0xd0] sm:$0xff] %vm274_vm0, %v386_v63  ;;  %v389_v4 = vsel %vm387_vm10, %v384_v0, %v386_v63  ;;  %v477_v5 = vpack.c.bf16 %v441_v3, %v438_v2 }
  0xb5   : > { %v479_v6 = vpack.c.bf16 %v1597_v1, %v389_v4 }
  0xb6   : > { %1532 = vmatpush3.bf16.msra.mxu1 %v477_v5 }
  0xb7   : > { %v382_v7 = vpop.permute.xlu0 %381  ;;  %1533 = vmatprep.subr.bf16.mxu1 %v1597_v1  ;;  %504 = vmatprep.subr.bf16.mxu0 %v479_v6 }
  0xb8   : > { %v388_v8 = vsel %vm387_vm10, %v382_v7, %v384_v0 }
  0xb9   : > { %v478_v10 = vpack.c.bf16 %v1597_v1, %v388_v8 }
  0xbb   : > { %v444_v11 = vld [vmem:[#allocation3 + $0xd0] sm:$0xff]  ;;  %505 = vmatpush1.bf16.msra.mxu0 %v478_v10 }
  0xbc   : > { %v480_v14 = vpack.c.bf16 %v447_v9, %v444_v11  ;;  %506 = vmatprep.subr.bf16.mxu0 %v1607_v15 }
  0xbe   : > { %1534 = vmatpush3.bf16.msra.mxu1 %v480_v14 }
  0xbf   : > { %1535 = vmatprep.subr.bf16.mxu1 %v1597_v1  ;;  %507 = vmatpush1.bf16.msra.mxu0 %v1607_v15 }
  0xc0   : > { %508 = vmatprep.subr.bf16.mxu0 %v1607_v15 }
  0xc2   : > { %1536 = vmatpush3.bf16.msra.mxu1 %v483_v16 }
  0xc3   : > { %1537 = vmatprep.subr.bf16.mxu1 %v1597_v1  ;;  %509 = vmatpush1.bf16.msra.mxu0 %v1607_v15 }
  0xc4   : > { %510 = vmatprep.subr.bf16.mxu0 %v1607_v15 }
  0xc6   : > { %1538 = vmatpush3.bf16.msra.mxu1 %v486_v19 }
  0xc7   : > { %1539 = vmatprep.subr.bf16.mxu1 %v1597_v1  ;;  %511 = vmatpush1.bf16.msra.mxu0 %v1607_v15  ;;  %v494_v1 = vpop.permute.xlu1 %493 }
  0xca   : > { %1540 = vmatpush3.bf16.msra.mxu1 %v489_v22  ;;  %529 = vmatmul.mubr.bf16.vlgmr.msra.gmra.mrb[0].mxu0 %v417_v23 }
  0xcd   : > { %1542 = vmatmul.mubr.bf16.vlgmr.msra.gmra.mrb[0].mxu1 %v417_v23 }
 0x19d   : > { %v530_v27 = vpop.f32.mrb[0].mxu0 }
 0x19e   : > { %v531_v28 = vadd.f32 %v530_v27, %v494_v1  ;;  %v532_v29 = vpop.f32.mrb[1].mxu0 }
 0x19f   : > { %v533_v30 = vadd.f32 %v532_v29, %v494_v1  ;;  %v534_v31 = vpop.f32.mrb[2].mxu0 }
 0x1a0   : > { %v571_v34 = vpop.f32.mrb[0].mxu1  ;;  %v535_v35 = vpop.f32.mrb[3].mxu0  ;;  %v577_v40 = vmax.f32 %v531_v28, 0.0 }
 0x1a1   : > { %v572_v38 = vadd.f32 %v571_v34, %v494_v1  ;;  %v1543_v39 = vpop.f32.mrb[1].mxu1  ;;  %v578_v41 = vmax.f32 %v533_v30, 0.0  ;;  %v1490_v1 = vcombine.high %v2013_v25, %v2013_v25  ;;  %v1320_v30 = vld [vmem:[%s2128_s4] sm:$0xff] }
 0x1a2   : > { %v574_v43 = vpop.f32.mrb[2].mxu1  ;;  %v1806_v51 = vadd.f32 %v577_v40, %v1763_v46  ;;  %v1817_v46 = vpop.permute.xlu1 %1038 }
 0x1a3   : > { %v579_v44 = vmax.f32 %v572_v38, 0.0  ;;  %v1544_v45 = vpop.f32.mrb[3].mxu1  ;;  %v1800_v47 = vadd.f32 %v578_v41, %v1755_v37  ;;  %1406 = vmatprep.mubr.bf16.mxu1 %v1490_v1  ;;  %1365 = vmatprep.mubr.bf16.mxu0 %v1490_v1 }
 0x1a4   : > { %v583_v56 = vmax.f32 %v1806_v51, 0.0 }
 0x1a5   : > { %v1803_v50 = vadd.f32 %v579_v44, %v1749_v33  ;;  %v584_v52 = vmax.f32 %v1800_v47, 0.0 }
 0x1a6   : > { %v607_v33 = vmul.f32 %v595_v57, %v583_v56  ;;  %v1819_v58 = vpop.permute.xlu1 %1064 }
 0x1a7   : > { %v585_v54 = vmax.f32 %v1803_v50, 0.0  ;;  %v608_v55 = vmul.f32 %v599_v48, %v584_v52 }
 0x1a9   : > { %v609_v37 = vmul.f32 %v603_v53, %v585_v54  ;;  %615 = vrot.lane.b32.xlu1 %v608_v55, %s1612_s24 }
 0x1aa   : > { %v1821_v59 = vpop.permute.xlu1 %1090 }
 0x1ab   : > { %617 = vrot.lane.b32.xlu0 %v609_v37, %s1612_s24 }
 0x1ae   : > { %v1823_v60 = vpop.permute.xlu1 %1116 }
 0x1af   : > { %613 = vrot.lane.b32.xlu0 %v607_v33, %s1612_s24  ;;  %s1621_s24 = smov 68  }
 0x21b   : > { %v616_v62 = vpop.permute.xlu1 %615 }
 0x21d   : > { %v618_v61 = vpop.permute.xlu0 %617 }
 0x21e   : > { %v621_v63 = vsel %vm619_vm12, %v616_v62, %v618_v61 }
 0x21f   : > { %628 = vst.msk [vmem:[#allocation2 + $0x10] sm:$0xff] %vm282_vm2, %v621_v63 }
 0x221   : > { %v614_v0 = vpop.permute.xlu0 %613 }
 0x222   : > { %626 = vst.msk [vmem:[#allocation2] sm:$0xff] %vm625_vm13, %v614_v0  ;;  %v1826_v2 = vsel %vm619_vm12, %v614_v0, %v616_v62  ;;  %vm731_vm12 = vcmask 883712   ;;  %vm812_vm13 = vcmask 850944  }
 0x226   : > { %v1828_v3 = vld [vmem:[#allocation2 + $0x10] sm:$0xff] }
 0x227   : > { %634 = vst.msk [vmem:[#allocation4 + $0x10] sm:$0xff] %vm274_vm0, %v1828_v3 }
 0x229   : > { %v1832_v4 = vld [vmem:[#allocation2] sm:$0xff] }
 0x22a   : > { %662 = vrot.lane.b32.xlu0 %v1832_v4, %s1613_s25  ;;  %641 = vrot.lane.b32.xlu1 %v1832_v4, %s1614_s26 }
 0x22e   : > { %704 = vrot.lane.b32.xlu0 %v1832_v4, %s1615_s12  ;;  %683 = vrot.lane.b32.xlu1 %v1832_v4, %s1616_s13 }
 0x232   : > { %746 = vrot.lane.b32.xlu0 %v1832_v4, %s1596_s28  ;;  %725 = vrot.lane.b32.xlu1 %v1832_v4, %s1617_s14 }
 0x236   : > { %786 = vrot.lane.b32.xlu0 %v1832_v4, %s1598_s29  ;;  %766 = vrot.lane.b32.xlu1 %v1832_v4, %s1595_s27 }
 0x23a   : > { %827 = vrot.lane.b32.xlu0 %v1832_v4, %s1618_s15  ;;  %806 = vrot.lane.b32.xlu1 %v1832_v4, %s1619_s20 }
 0x23e   : > { %868 = vrot.lane.b32.xlu0 %v1832_v4, %s1600_s7  ;;  %848 = vrot.lane.b32.xlu1 %v1832_v4, %s1599_s30 }
 0x242   : > { %908 = vrot.lane.b32.xlu0 %v1832_v4, %s2131_s23  ;;  %888 = vrot.lane.b32.xlu1 %v1832_v4, %s1601_s8  ;;  %s1622_s23 = smov 64  }
 0x246   : > { %950 = vrot.lane.b32.xlu0 %v1832_v4, %s1602_s9  ;;  %929 = vrot.lane.b32.xlu1 %v1832_v4, %s1621_s24 }
 0x24a   : > { %990 = vrot.lane.b32.xlu0 %v1832_v4, %s1604_s11  ;;  %970 = vrot.lane.b32.xlu1 %v1832_v4, %s1603_s10 }
 0x24e   : > { %1032 = vrot.lane.b32.xlu0 %v1832_v4, %s1608_s16  ;;  %1010 = vrot.lane.b32.xlu1 %v1832_v4, %s1622_s23 }
 0x252   : > { %1084 = vrot.lane.b32.xlu0 %v1832_v4, %s1610_s18  ;;  %1058 = vrot.lane.b32.xlu1 %v1832_v4, %s1609_s17 }
 0x256   : > { %645 = vrot.lane.b32.xlu0 %v1828_v3, %s1614_s26  ;;  %1110 = vrot.lane.b32.xlu1 %v1832_v4, %s1611_s19 }
 0x25a   : > { %664 = vrot.lane.b32.xlu0 %v1826_v2, %s1613_s25  ;;  %643 = vrot.lane.b32.xlu1 %v1826_v2, %s1614_s26 }
 0x25e   : > { %685 = vrot.lane.b32.xlu0 %v1826_v2, %s1616_s13  ;;  %666 = vrot.lane.b32.xlu1 %v1828_v3, %s1613_s25 }
 0x262   : > { %706 = vrot.lane.b32.xlu0 %v1826_v2, %s1615_s12  ;;  %687 = vrot.lane.b32.xlu1 %v1828_v3, %s1616_s13 }
 0x266   : > { %727 = vrot.lane.b32.xlu0 %v1826_v2, %s1617_s14  ;;  %708 = vrot.lane.b32.xlu1 %v1828_v3, %s1615_s12 }
 0x26a   : > { %748 = vrot.lane.b32.xlu0 %v1826_v2, %s1596_s28  ;;  %729 = vrot.lane.b32.xlu1 %v1828_v3, %s1617_s14 }
 0x26e   : > { %768 = vrot.lane.b32.xlu0 %v1826_v2, %s1595_s27  ;;  %750 = vrot.lane.b32.xlu1 %v1828_v3, %s1596_s28  ;;  %s1623_s28 = smov 44  }
 0x272   : > { %788 = vrot.lane.b32.xlu0 %v1826_v2, %s1598_s29  ;;  %770 = vrot.lane.b32.xlu1 %v1828_v3, %s1595_s27  ;;  %s2133_s27 = smov 84  }
 0x276   : > { %808 = vrot.lane.b32.xlu0 %v1826_v2, %s1619_s20  ;;  %790 = vrot.lane.b32.xlu1 %v1828_v3, %s1598_s29 }
 0x27a   : > { %829 = vrot.lane.b32.xlu0 %v1826_v2, %s1618_s15  ;;  %810 = vrot.lane.b32.xlu1 %v1828_v3, %s1619_s20 }
 0x27e   : > { %850 = vrot.lane.b32.xlu0 %v1826_v2, %s1599_s30  ;;  %831 = vrot.lane.b32.xlu1 %v1828_v3, %s1618_s15 }
 0x282   : > { %870 = vrot.lane.b32.xlu0 %v1826_v2, %s1600_s7  ;;  %852 = vrot.lane.b32.xlu1 %v1828_v3, %s1599_s30 }
 0x286   : > { %890 = vrot.lane.b32.xlu0 %v1826_v2, %s1601_s8  ;;  %872 = vrot.lane.b32.xlu1 %v1828_v3, %s1600_s7 }
 0x28a   : > { %910 = vrot.lane.b32.xlu0 %v1826_v2, %s2133_s27  ;;  %892 = vrot.lane.b32.xlu1 %v1828_v3, %s1601_s8 }
 0x28e   : > { %931 = vrot.lane.b32.xlu0 %v1826_v2, %s1621_s24  ;;  %912 = vrot.lane.b32.xlu1 %v1828_v3, %s2133_s27 }
 0x292   : > { %954 = vrot.lane.b32.xlu0 %v1828_v3, %s1602_s9  ;;  %933 = vrot.lane.b32.xlu1 %v1828_v3, %s1621_s24 }
 0x296   : > { %952 = vrot.lane.b32.xlu0 %v1826_v2, %s1602_s9  ;;  %974 = vrot.lane.b32.xlu1 %v1828_v3, %s1603_s10  ;;  %s1545_s9 = smul.u32 24, %s2135_s22 }
 0x29a   : > { %994 = vrot.lane.b32.xlu0 %v1828_v3, %s1604_s11  ;;  %972 = vrot.lane.b32.xlu1 %v1826_v2, %s1603_s10 }
 0x29c   : > { %v663_v5 = vpop.permute.xlu0 %662  ;;  %v642_v6 = vpop.permute.xlu1 %641 }
 0x29e   : > { %992 = vrot.lane.b32.xlu0 %v1826_v2, %s1604_s11  ;;  %1014 = vrot.lane.b32.xlu1 %v1828_v3, %s1622_s23 }
 0x2a0   : > { %v1954_v7 = vpop.permute.xlu0 %704  ;;  %v684_v8 = vpop.permute.xlu1 %683 }
 0x2a2   : > { %1036 = vrot.lane.b32.xlu0 %v1828_v3, %s1608_s16  ;;  %1012 = vrot.lane.b32.xlu1 %v1826_v2, %s1622_s23 }
 0x2a4   : > { %v1960_v9 = vpop.permute.xlu0 %746  ;;  %v1962_v10 = vpop.permute.xlu1 %725 }
 0x2a6   : > { %1062 = vrot.lane.b32.xlu0 %v1828_v3, %s1609_s17  ;;  %1060 = vrot.lane.b32.xlu1 %v1826_v2, %s1609_s17 }
 0x2a8   : > { %v1968_v11 = vpop.permute.xlu0 %786  ;;  %v1970_v12 = vpop.permute.xlu1 %766 }
 0x2aa   : > { %1034 = vrot.lane.b32.xlu0 %v1826_v2, %s1608_s16  ;;  %1112 = vrot.lane.b32.xlu1 %v1826_v2, %s1611_s19  ;;  %s251_s16 = scalar_lea.vmem %s2130_s6, %s1545_s9 }
 0x2ac   : > { %v1976_v13 = vpop.permute.xlu0 %827  ;;  %v1978_v14 = vpop.permute.xlu1 %806 }
 0x2ae   : > { %1088 = vrot.lane.b32.xlu0 %v1828_v3, %s1610_s18  ;;  %1142 = vrot.lane.b32.xlu1 %v1786_v24, %s1623_s28 }
 0x2b0   : > { %v1983_v15 = vpop.permute.xlu0 %868  ;;  %v1985_v16 = vpop.permute.xlu1 %848 }
 0x2b2   : > { %1114 = vrot.lane.b32.xlu0 %v1828_v3, %s1611_s19  ;;  %1136 = vrot.lane.b32.xlu1 %v1832_v4, %s1623_s28 }
 0x2b4   : > { %v1990_v17 = vpop.permute.xlu0 %908  ;;  %v1992_v18 = vpop.permute.xlu1 %888 }
 0x2b6   : > { %1086 = vrot.lane.b32.xlu0 %v1826_v2, %s1610_s18 }
 0x2b8   : > { %v1996_v19 = vpop.permute.xlu0 %950  ;;  %v1998_v20 = vpop.permute.xlu1 %929 }
 0x2ba   : > { %1140 = vrot.lane.b32.xlu0 %v1828_v3, %s1623_s28 }
 0x2bc   : > { %v2001_v21 = vpop.permute.xlu0 %990  ;;  %v2003_v22 = vpop.permute.xlu1 %970 }
 0x2be   : > { %1138 = vrot.lane.b32.xlu0 %v1826_v2, %s1623_s28 }
 0x2c0   : > { %v2006_v23 = vpop.permute.xlu0 %1032  ;;  %v2008_v24 = vpop.permute.xlu1 %1010 }
 0x2c2   : > { %1323 = vperm.xlu0 %1583, %v1320_v30  }
 0x2c4   : > { %v2017_v26 = vpop.permute.xlu0 %1084  ;;  %v2019_v27 = vpop.permute.xlu1 %1058 }
 0x2c8   : > { %v646_v28 = vpop.permute.xlu0 %645  ;;  %v2021_v29 = vpop.permute.xlu1 %1110 }
 0x2c9   : > { %655 = vst.msk [vmem:[#allocation4 + $0x28] sm:$0xff] %vm274_vm0, %v646_v28 }
 0x2cc   : > { %v665_v31 = vpop.permute.xlu0 %664  ;;  %v644_v32 = vpop.permute.xlu1 %643 }
 0x2cd   : > { %v669_v34 = vsel %vm668_vm14, %v663_v5, %v665_v31  ;;  %v648_v35 = vsel %vm647_vm15, %v642_v6, %v644_v32  ;;  %v649_v36 = vsel %vm647_vm15, %v644_v32, %v646_v28 }
 0x2ce   : > { %v1273_v38 = vpack.c.bf16 %v649_v36, %v1826_v2  ;;  %v1272_v39 = vpack.c.bf16 %v648_v35, %v1832_v4 }
 0x2d0   : > { %v686_v40 = vpop.permute.xlu0 %685  ;;  %v667_v41 = vpop.permute.xlu1 %666  ;;  %1333 = vmatprep.subr.bf16.mxu0 %v1273_v38 }
 0x2d1   : > { %v690_v42 = vsel %vm689_vm1, %v684_v8, %v686_v40  ;;  %v670_v43 = vsel %vm668_vm14, %v665_v31, %v667_v41  ;;  %676 = vst.msk [vmem:[#allocation4 + $0x40] sm:$0xff] %vm274_vm0, %v667_v41  ;;  %1334 = vmatpush1.bf16.msra.mxu0 %v1272_v39 }
 0x2d2   : > { %v1275_v55 = vpack.c.bf16 %v690_v42, %v669_v34 }
 0x2d4   : > { %v707_v44 = vpop.permute.xlu0 %706  ;;  %v688_v45 = vpop.permute.xlu1 %687 }
 0x2d5   : > { %v711_v48 = vsel %vm710_vm11, %v1954_v7, %v707_v44  ;;  %v691_v49 = vsel %vm689_vm1, %v686_v40, %v688_v45  ;;  %697 = vst.msk [vmem:[#allocation4 + $0x58] sm:$0xff] %vm274_vm0, %v688_v45 }
 0x2d6   : > { %v1276_v53 = vpack.c.bf16 %v691_v49, %v670_v43 }
 0x2d8   : > { %v728_v37 = vpop.permute.xlu0 %727  ;;  %v709_v57 = vpop.permute.xlu1 %708  ;;  %1335 = vmatprep.subr.bf16.mxu0 %v1276_v53 }
 0x2d9   : > { %v732_v33 = vsel %vm731_vm12, %v1962_v10, %v728_v37  ;;  %v712_v61 = vsel %vm710_vm11, %v707_v44, %v709_v57  ;;  %718 = vst.msk [vmem:[#allocation4 + $0x70] sm:$0xff] %vm274_vm0, %v709_v57  ;;  %1336 = vmatpush1.bf16.msra.mxu0 %v1275_v55 }
 0x2da   : > { %v1278_v4 = vpack.c.bf16 %v732_v33, %v711_v48 }
 0x2dc   : > { %v749_v62 = vpop.permute.xlu0 %748  ;;  %v730_v63 = vpop.permute.xlu1 %729 }
 0x2dd   : > { %v752_v0 = vsel %vm266_vm3, %v1960_v9, %v749_v62  ;;  %v733_v2 = vsel %vm731_vm12, %v728_v37, %v730_v63  ;;  %739 = vst.msk [vmem:[#allocation4 + $0x88] sm:$0xff] %vm274_vm0, %v730_v63 }
 0x2de   : > { %v1279_v3 = vpack.c.bf16 %v733_v2, %v712_v61 }
 0x2e0   : > { %v769_v5 = vpop.permute.xlu0 %768  ;;  %v751_v6 = vpop.permute.xlu1 %750  ;;  %1337 = vmatprep.subr.bf16.mxu0 %v1279_v3 }
 0x2e1   : > { %v772_v7 = vsel %vm282_vm2, %v1970_v12, %v769_v5  ;;  %v753_v8 = vsel %vm266_vm3, %v749_v62, %v751_v6  ;;  %759 = vst.msk [vmem:[#allocation4 + $0xa0] sm:$0xff] %vm274_vm0, %v751_v6  ;;  %1338 = vmatpush1.bf16.msra.mxu0 %v1278_v4  ;;  %vm833_vm3 = vcmask 719872  }
 0x2e2   : > { %v1281_v31 = vpack.c.bf16 %v772_v7, %v752_v0 }
 0x2e4   : > { %v789_v10 = vpop.permute.xlu0 %788  ;;  %v771_v1 = vpop.permute.xlu1 %770 }
 0x2e5   : > { %v792_v9 = vsel %vm297_vm4, %v1968_v11, %v789_v10  ;;  %v773_v28 = vsel %vm282_vm2, %v769_v5, %v771_v1  ;;  %779 = vst.msk [vmem:[#allocation4 + $0xb8] sm:$0xff] %vm274_vm0, %v771_v1  ;;  %vm914_vm2 = vcmask 687104  }
 0x2e6   : > { %v1282_v30 = vpack.c.bf16 %v773_v28, %v753_v8 }
 0x2e8   : > { %v809_v32 = vpop.permute.xlu0 %808  ;;  %v791_v34 = vpop.permute.xlu1 %790  ;;  %1339 = vmatprep.subr.bf16.mxu0 %v1282_v30 }
 0x2e9   : > { %v813_v12 = vsel %vm812_vm13, %v1978_v14, %v809_v32  ;;  %v793_v35 = vsel %vm297_vm4, %v789_v10, %v791_v34  ;;  %799 = vst.msk [vmem:[#allocation4 + $0xd0] sm:$0xff] %vm274_vm0, %v791_v34  ;;  %1340 = vmatpush1.bf16.msra.mxu0 %v1281_v31  ;;  %vm935_vm4 = vcmask 556032  }
 0x2ea   : > { %v1284_v41 = vpack.c.bf16 %v813_v12, %v792_v9 }
 0x2ec   : > { %v830_v36 = vpop.permute.xlu0 %829  ;;  %v811_v11 = vpop.permute.xlu1 %810 }
 0x2ed   : > { %v834_v38 = vsel %vm833_vm3, %v1976_v13, %v830_v36  ;;  %v814_v39 = vsel %vm812_vm13, %v809_v32, %v811_v11  ;;  %820 = vst.msk [vmem:[#allocation4 + $0xe8] sm:$0xff] %vm274_vm0, %v811_v11 }
 0x2ee   : > { %v1285_v40 = vpack.c.bf16 %v814_v39, %v793_v35 }
 0x2f0   : > { %v851_v42 = vpop.permute.xlu0 %850  ;;  %v832_v43 = vpop.permute.xlu1 %831  ;;  %1341 = vmatprep.subr.bf16.mxu0 %v1285_v40 }
 0x2f1   : > { %v854_v14 = vsel %vm312_vm5, %v1985_v16, %v851_v42  ;;  %v835_v44 = vsel %vm833_vm3, %v830_v36, %v832_v43  ;;  %841 = vst.msk [vmem:[#allocation4 + $0x100] sm:$0xff] %vm274_vm0, %v832_v43  ;;  %1342 = vmatpush1.bf16.msra.mxu0 %v1284_v41  ;;  %v1181_v36 = vld [vmem:[#allocation4 + $0x28] sm:$0xff]  ;;  %v1178_v43 = vld [vmem:[#allocation4 + $0x10] sm:$0xff] }
 0x2f2   : > { %v1287_v45 = vpack.c.bf16 %v854_v14, %v834_v38 }
 0x2f4   : > { %v871_v48 = vpop.permute.xlu0 %870  ;;  %v853_v49 = vpop.permute.xlu1 %852 }
 0x2f5   : > { %v874_v13 = vsel %vm327_vm6, %v1983_v15, %v871_v48  ;;  %v855_v53 = vsel %vm312_vm5, %v851_v42, %v853_v49  ;;  %861 = vst.msk [vmem:[#allocation4 + $0x118] sm:$0xff] %vm274_vm0, %v853_v49  ;;  %vm1040_vm5 = vcmask 392192  }
 0x2f6   : > { %v1288_v55 = vpack.c.bf16 %v855_v53, %v835_v44  ;;  %v1187_v53 = vld [vmem:[#allocation4 + $0x58] sm:$0xff] }
 0x2f8   : > { %v891_v37 = vpop.permute.xlu0 %890  ;;  %v873_v57 = vpop.permute.xlu1 %872  ;;  %1343 = vmatprep.subr.bf16.mxu0 %v1288_v55 }
 0x2f9   : > { %v894_v16 = vsel %vm342_vm7, %v1992_v18, %v891_v37  ;;  %v875_v33 = vsel %vm327_vm6, %v871_v48, %v873_v57  ;;  %881 = vst.msk [vmem:[#allocation4 + $0x130] sm:$0xff] %vm274_vm0, %v873_v57  ;;  %1344 = vmatpush1.bf16.msra.mxu0 %v1287_v45  ;;  %vm1066_vm6 = vcmask 384000  }
 0x2fa   : > { %v1290_v2 = vpack.c.bf16 %v894_v16, %v874_v13 }
 0x2fc   : > { %v911_v61 = vpop.permute.xlu0 %910  ;;  %v893_v62 = vpop.permute.xlu1 %892 }
 0x2fd   : > { %v915_v15 = vsel %vm914_vm2, %v1990_v17, %v911_v61  ;;  %v895_v63 = vsel %vm342_vm7, %v891_v37, %v893_v62  ;;  %901 = vst.msk [vmem:[#allocation4 + $0x148] sm:$0xff] %vm274_vm0, %v893_v62  ;;  %vm1118_vm7 = vcmask 367616  }
 0x2fe   : > { %v1291_v0 = vpack.c.bf16 %v895_v63, %v875_v33 }
 0x300   : > { %v932_v3 = vpop.permute.xlu0 %931  ;;  %v913_v4 = vpop.permute.xlu1 %912  ;;  %1345 = vmatprep.subr.bf16.mxu0 %v1291_v0 }
 0x301   : > { %v936_v18 = vsel %vm935_vm4, %v1998_v20, %v932_v3  ;;  %v916_v5 = vsel %vm914_vm2, %v911_v61, %v913_v4  ;;  %922 = vst.msk [vmem:[#allocation4 + $0x160] sm:$0xff] %vm274_vm0, %v913_v4  ;;  %1346 = vmatpush1.bf16.msra.mxu0 %v1290_v2 }
 0x302   : > { %v1293_v10 = vpack.c.bf16 %v936_v18, %v915_v15 }
 0x304   : > { %v955_v6 = vpop.permute.xlu0 %954  ;;  %v934_v7 = vpop.permute.xlu1 %933 }
 0x305   : > { %963 = vst.msk [vmem:[#allocation4 + $0x190] sm:$0xff] %vm274_vm0, %v955_v6  ;;  %v937_v17 = vsel %vm935_vm4, %v932_v3, %v934_v7  ;;  %943 = vst.msk [vmem:[#allocation4 + $0x178] sm:$0xff] %vm274_vm0, %v934_v7 }
 0x306   : > { %v1294_v8 = vpack.c.bf16 %v937_v17, %v916_v5  ;;  %v1193_v5 = vld [vmem:[#allocation4 + $0x88] sm:$0xff] }
 0x308   : > { %v953_v1 = vpop.permute.xlu0 %952  ;;  %v975_v9 = vpop.permute.xlu1 %974  ;;  %1347 = vmatprep.subr.bf16.mxu0 %v1294_v8  ;;  %v1190_v8 = vld [vmem:[#allocation4 + $0x70] sm:$0xff] }
 0x309   : > { %v956_v28 = vsel %vm357_vm8, %v1996_v19, %v953_v1  ;;  %v957_v20 = vsel %vm357_vm8, %v953_v1, %v955_v6  ;;  %983 = vst.msk [vmem:[#allocation4 + $0x1a8] sm:$0xff] %vm274_vm0, %v975_v9  ;;  %1348 = vmatpush1.bf16.msra.mxu0 %v1293_v10  ;;  %vm1092_vm8 = vcmask 375808   ;;  %v1280_v10 = vpack.c.bf16 %v1193_v5, %v1190_v8 }
 0x30c   : > { %v995_v30 = vpop.permute.xlu0 %994  ;;  %v973_v31 = vpop.permute.xlu1 %972  ;;  %v1226_v19 = vld [vmem:[#allocation4 + $0x190] sm:$0xff] }
 0x30d   : > { %1003 = vst.msk [vmem:[#allocation4 + $0x1c0] sm:$0xff] %vm274_vm0, %v995_v30  ;;  %v976_v32 = vsel %vm372_vm9, %v2003_v22, %v973_v31  ;;  %v977_v34 = vsel %vm372_vm9, %v973_v31, %v975_v9  ;;  %v1274_v22 = vpack.c.bf16 %v1181_v36, %v1178_v43  ;;  %vm1144_vm9 = vcmask 359424  }
 0x30e   : > { %v1297_v12 = vpack.c.bf16 %v977_v34, %v957_v20  ;;  %v1296_v35 = vpack.c.bf16 %v976_v32, %v956_v28 }
 0x310   : > { %v993_v11 = vpop.permute.xlu0 %992  ;;  %v1015_v38 = vpop.permute.xlu1 %1014  ;;  %v1229_v39 = vld [vmem:[#allocation4 + $0x1a8] sm:$0xff]  ;;  %1349 = vmatprep.subr.bf16.mxu0 %v1297_v12  ;;  %v1199_v12 = vld [vmem:[#allocation4 + $0xb8] sm:$0xff] }
 0x311   : > { %v996_v40 = vsel %vm387_vm10, %v2001_v21, %v993_v11  ;;  %v997_v41 = vsel %vm387_vm10, %v993_v11, %v995_v30  ;;  %1023 = vst.msk [vmem:[#allocation4 + $0x1d8] sm:$0xff] %vm274_vm0, %v1015_v38  ;;  %v1298_v42 = vpack.c.bf16 %v1229_v39, %v1226_v19  ;;  %1350 = vmatpush1.bf16.msra.mxu0 %v1296_v35 }
 0x313   : > { %1503 = vmatprep.subr.bf16.mxu1 %v1298_v42  ;;  %v1586_v42 = vld [vmem:[#allocation3 + $0xd8] sm:$0xff] }
 0x314   : > { %v1037_v14 = vpop.permute.xlu0 %1036  ;;  %1504 = vmatpush3.bf16.msra.mxu1 %v1274_v22  ;;  %v1013_v44 = vpop.permute.xlu1 %1012  ;;  %v1232_v57 = vld [vmem:[#allocation4 + $0x1c0] sm:$0xff] }
 0x315   : > { %v1043_v45 = vsel %vm1040_vm5, %v1037_v14, %v1817_v46  ;;  %v1016_v48 = vsel %vm274_vm0, %v2008_v24, %v1013_v44  ;;  %v1017_v21 = vsel %vm274_vm0, %v1013_v44, %v1015_v38  ;;  %v1184_v24 = vld [vmem:[#allocation4 + $0x40] sm:$0xff]  ;;  %v1253_v44 = vld [vmem:[#allocation4 + $0x268] sm:$0xff] }
 0x316   : > { %1049 = vst.msk [vmem:[#allocation4 + $0x1f0] sm:$0xff] %vm274_vm0, %v1043_v45  ;;  %v1300_v49 = vpack.c.bf16 %v1017_v21, %v997_v41  ;;  %v1299_v13 = vpack.c.bf16 %v1016_v48, %v996_v40  ;;  %v1277_v15 = vpack.c.bf16 %v1187_v53, %v1184_v24  ;;  %v1196_v38 = vld [vmem:[#allocation4 + $0xa0] sm:$0xff]  ;;  %v1259_v48 = vld [vmem:[#allocation4 + $0x298] sm:$0xff]  ;;  %v1205_v21 = vld [vmem:[#allocation4 + $0xe8] sm:$0xff] }
 0x317   : > { %v1283_v19 = vpack.c.bf16 %v1199_v12, %v1196_v38  ;;  %v1256_v45 = vld [vmem:[#allocation4 + $0x280] sm:$0xff]  ;;  %v1202_v53 = vld [vmem:[#allocation4 + $0xd0] sm:$0xff] }
 0x318   : > { %v1063_v55 = vpop.permute.xlu0 %1062  ;;  %v1061_v37 = vpop.permute.xlu1 %1060  ;;  %v1235_v16 = vld [vmem:[#allocation4 + $0x1d8] sm:$0xff]  ;;  %1351 = vmatprep.subr.bf16.mxu0 %v1300_v49  ;;  %v1268_v24 = vld [vmem:[#allocation4 + $0x2e0] sm:$0xff] }
 0x319   : > { %v1069_v33 = vsel %vm1066_vm6, %v1063_v55, %v1819_v58  ;;  %v1067_v46 = vsel %vm1066_vm6, %v2019_v27, %v1061_v37  ;;  %v1068_v61 = vsel %vm1066_vm6, %v1061_v37, %v1063_v55  ;;  %v1301_v62 = vpack.c.bf16 %v1235_v16, %v1232_v57  ;;  %1352 = vmatpush1.bf16.msra.mxu0 %v1299_v13  ;;  %v1262_v57 = vld [vmem:[#allocation4 + $0x2b0] sm:$0xff]  ;;  %v1265_v16 = vld [vmem:[#allocation4 + $0x2c8] sm:$0xff] }
 0x31a   : > { %1075 = vst.msk [vmem:[#allocation4 + $0x208] sm:$0xff] %vm274_vm0, %v1069_v33  ;;  %v1313_v55 = vpack.c.bf16 %v1259_v48, %v1256_v45  ;;  %v1286_v37 = vpack.c.bf16 %v1205_v21, %v1202_v53  ;;  %v1211_v33 = vld [vmem:[#allocation4 + $0x118] sm:$0xff] }
 0x31b   : > { %1505 = vmatprep.subr.bf16.mxu1 %v1301_v62 }
 0x31c   : > { %v1035_v63 = vpop.permute.xlu0 %1034  ;;  %1506 = vmatpush3.bf16.msra.mxu1 %v1277_v15  ;;  %v1113_v0 = vpop.permute.xlu1 %1112  ;;  %v1271_v15 = vld [vmem:[#allocation4 + $0x2f8] sm:$0xff] }
 0x31d   : > { %v1041_v2 = vsel %vm1040_vm5, %v2006_v23, %v1035_v63  ;;  %v1042_v3 = vsel %vm1040_vm5, %v1035_v63, %v1037_v14  ;;  %v1119_v58 = vsel %vm1118_vm7, %v2021_v29, %v1113_v0  ;;  %v1238_v7 = vld [vmem:[#allocation4 + $0x1f0] sm:$0xff]  ;;  %v1312_v14 = vpack.c.bf16 %v1586_v42, %v1586_v42  ;;  %v1217_v63 = vld [vmem:[#allocation4 + $0x148] sm:$0xff] }
 0x31e   : > { %v1303_v27 = vpack.c.bf16 %v1068_v61, %v1042_v3  ;;  %v1302_v4 = vpack.c.bf16 %v1067_v46, %v1041_v2  ;;  %v1208_v46 = vld [vmem:[#allocation4 + $0x100] sm:$0xff]  ;;  %v1316_v61 = vpack.c.bf16 %v1265_v16, %v1262_v57  ;;  %v1319_v2 = vpack.c.bf16 %v1271_v15, %v1268_v24 }
 0x31f   : > { %v1289_v62 = vpack.c.bf16 %v1211_v33, %v1208_v46 }
 0x320   : > { %v1089_v18 = vpop.permute.xlu0 %1088  ;;  %1353 = vmatprep.subr.bf16.mxu0 %v1303_v27  ;;  %v1143_v30 = vpop.permute.xlu1 %1142  ;;  %v1489_v27 = vcombine.low %v2013_v25, %v2013_v25 }
 0x321   : > { %v1095_v6 = vsel %vm1092_vm8, %v1089_v18, %v1821_v59  ;;  %v1241_v17 = vld [vmem:[#allocation4 + $0x208] sm:$0xff]  ;;  %1354 = vmatpush1.bf16.msra.mxu0 %v1302_v4  ;;  %v1220_v4 = vld [vmem:[#allocation4 + $0x160] sm:$0xff] }
 0x322   : > { %1101 = vst.msk [vmem:[#allocation4 + $0x220] sm:$0xff] %vm274_vm0, %v1095_v6  ;;  %v1304_v23 = vpack.c.bf16 %v1241_v17, %v1238_v7 }
 0x324   : > { %v1115_v1 = vpop.permute.xlu0 %1114  ;;  %1507 = vmatprep.subr.bf16.mxu1 %v1304_v23 }
 0x325   : > { %v1120_v29 = vsel %vm1118_vm7, %v1113_v0, %v1115_v1  ;;  %v1121_v9 = vsel %vm1118_vm7, %v1115_v1, %v1823_v60  ;;  %1508 = vmatpush3.bf16.msra.mxu1 %v1280_v10  ;;  %v1214_v0 = vld [vmem:[#allocation4 + $0x130] sm:$0xff] }
 0x326   : > { %1127 = vst.msk [vmem:[#allocation4 + $0x238] sm:$0xff] %vm274_vm0, %v1121_v9  ;;  %v1292_v3 = vpack.c.bf16 %v1217_v63, %v1214_v0 }
 0x328   : > { %v1087_v28 = vpop.permute.xlu0 %1086 }
 0x329   : > { %v1093_v59 = vsel %vm1092_vm8, %v2017_v26, %v1087_v28  ;;  %v1094_v20 = vsel %vm1092_vm8, %v1087_v28, %v1089_v18  ;;  %v1244_v36 = vld [vmem:[#allocation4 + $0x220] sm:$0xff]  ;;  %v1137_v26 = vpop.permute.xlu1 %1136 }
 0x32a   : > { %v1306_v31 = vpack.c.bf16 %v1120_v29, %v1094_v20  ;;  %v1305_v32 = vpack.c.bf16 %v1119_v58, %v1093_v59  ;;  %v1223_v58 = vld [vmem:[#allocation4 + $0x178] sm:$0xff] }
 0x32b   : > { %v1295_v18 = vpack.c.bf16 %v1223_v58, %v1220_v4 }
 0x32c   : > { %v1141_v34 = vpop.permute.xlu0 %1140  ;;  %1355 = vmatprep.subr.bf16.mxu0 %v1306_v31 }
 0x32d   : > { %v1147_v35 = vsel %vm1144_vm9, %v1141_v34, %v1143_v30  ;;  %v1247_v60 = vld [vmem:[#allocation4 + $0x238] sm:$0xff]  ;;  %1356 = vmatpush1.bf16.msra.mxu0 %v1305_v32 }
 0x32e   : > { %1153 = vst.msk [vmem:[#allocation4 + $0x250] sm:$0xff] %vm274_vm0, %v1147_v35  ;;  %v1307_v11 = vpack.c.bf16 %v1247_v60, %v1244_v36 }
 0x330   : > { %v1139_v39 = vpop.permute.xlu0 %1138  ;;  %1509 = vmatprep.subr.bf16.mxu1 %v1307_v11 }
 0x331   : > { %v1145_v40 = vsel %vm1144_vm9, %v1137_v26, %v1139_v39  ;;  %v1146_v41 = vsel %vm1144_vm9, %v1139_v39, %v1141_v34  ;;  %1510 = vmatpush3.bf16.msra.mxu1 %v1283_v19 }
 0x332   : > { %v1309_v43 = vpack.c.bf16 %v1586_v42, %v1146_v41  ;;  %v1308_v22 = vpack.c.bf16 %v1586_v42, %v1145_v40 }
 0x334   : > { %1357 = vmatprep.subr.bf16.mxu0 %v1309_v43 }
 0x335   : > { %v1250_v49 = vld [vmem:[#allocation4 + $0x250] sm:$0xff]  ;;  %1358 = vmatpush1.bf16.msra.mxu0 %v1308_v22 }
 0x336   : > { %v1310_v13 = vpack.c.bf16 %v1253_v44, %v1250_v49  ;;  %1359 = vmatprep.subr.bf16.mxu0 %v1312_v14 }
 0x338   : > { %1511 = vmatprep.subr.bf16.mxu1 %v1310_v13 }
 0x339   : > { %1512 = vmatpush3.bf16.msra.mxu1 %v1286_v37  ;;  %1360 = vmatpush1.bf16.msra.mxu0 %v1312_v14 }
 0x33a   : > { %1513 = vmatprep.subr.bf16.mxu1 %v1313_v55  ;;  %1361 = vmatprep.subr.bf16.mxu0 %v1312_v14 }
 0x33d   : > { %1514 = vmatpush3.bf16.msra.mxu1 %v1289_v62  ;;  %1362 = vmatpush1.bf16.msra.mxu0 %v1312_v14 }
 0x33e   : > { %1515 = vmatprep.subr.bf16.mxu1 %v1316_v61  ;;  %1363 = vmatprep.subr.bf16.mxu0 %v1312_v14 }
 0x341   : > { %1516 = vmatpush3.bf16.msra.mxu1 %v1292_v3  ;;  %1364 = vmatpush1.bf16.msra.mxu0 %v1312_v14  ;;  %v1324_v5 = vpop.permute.xlu0 %1323 }
 0x342   : > { %1517 = vmatprep.subr.bf16.mxu1 %v1319_v2 }
 0x344   : > { %1366 = vmatmul.mubr.bf16.vlgmr.msra.gmra.mrb[4].mxu0 %v1489_v27 }
 0x345   : > { %1518 = vmatpush3.bf16.msra.mxu1 %v1295_v18 }
 0x348   : > { %1407 = vmatmul.mubr.bf16.vlgmr.msra.gmra.mrb[4].mxu1 %v1489_v27 }
 0x417   : > { %v1367_v6 = vpop.f32.mrb[4].mxu0 }
 0x418   : > { %v1368_v7 = vadd.f32 %v1367_v6, %v1324_v5  ;;  %v1369_v17 = vpop.f32.mrb[5].mxu0 }
 0x419   : > { %v1370_v23 = vadd.f32 %v1369_v17, %v1324_v5  ;;  %v1371_v8 = vpop.f32.mrb[6].mxu0 }
 0x41a   : > { %v1414_v10 = vmax.f32 %v1368_v7, 0.0  ;;  %v1372_v1 = vpop.f32.mrb[7].mxu0 }
 0x41b   : > { %v1519_v29 = vpop.f32.mrb[4].mxu1  ;;  %v1415_v9 = vmax.f32 %v1370_v23, 0.0 }
 0x41c   : > { %v1520_v25 = vpop.f32.mrb[5].mxu1  ;;  %v1417_v28 = vadd.f32 %v1414_v10, %v583_v56 }
 0x41d   : > { %v1521_v59 = vadd.f32 %v1520_v25, %v1519_v29  ;;  %v1522_v20 = vpop.f32.mrb[6].mxu1  ;;  %v1418_v30 = vadd.f32 %v1415_v9, %v584_v52 }
 0x41e   : > { %v1523_v31 = vpop.f32.mrb[7].mxu1  ;;  %v1420_v32 = vmax.f32 %v1417_v28, 0.0 }
 0x41f   : > { %v1409_v34 = vadd.f32 %v1521_v59, %v1324_v5  ;;  %v1421_v12 = vmax.f32 %v1418_v30, 0.0 }
 0x420   : > { %1423 = vst [vmem:[%s251_s16] sm:$0xff] %v1420_v32 }
 0x421   : > { %v1416_v35 = vmax.f32 %v1409_v34, 0.0  ;;  %1424 = vst [vmem:[%s251_s16 + $0x8] sm:$0xff] %v1421_v12 }
 0x423   : > { %v1419_v51 = vadd.f32 %v1416_v35, %v585_v54 }
 0x425   : > { %v1422_v56 = vmax.f32 %v1419_v51, 0.0 }
 0x427   : > { %1425 = vst.msk [vmem:[%s251_s16 + $0x10] sm:$0xff] %vm274_vm0, %v1422_v56 }
 0x428 PF: > { %s16_s21 = sadd.s32 1, %s1593_s21  }
 0x429   : > { %p13_p4 = scmp.ge.s32.totalorder %s16_s21, 4  }
 0x42b   :  { %15 = sbr.rel (!%p13_p4) target bundleno = 1 (0x1), region = 74 }

</bundles_post_ra>
